<compile_context>
chip_gen: v7x
topology: tpu7x:2x2x1
jax: 0.10.0
libtpu: 0.0.40
codegen_flags: <defaults>
</compile_context>

<pallas_src>
import jax
import jax.numpy as jnp
from jax import lax
from jax.experimental import pallas as pl
from jax.experimental.pallas import tpu as pltpu

INPUT_SIZE = 50
HIDDEN = 64
NUM_LAYERS = 3
SEQ_LEN = 70          # fc = Linear(64 * 70, 1) hard-wires the sequence length
BATCH = 2
UNROLL = 4            # steady-state trip count is T - 2 = 68 = 4 * 17


def _sigmoid(x):
    # Exact identity; keeps all transcendentals on the native EUP tanh path.
    return 0.5 * (jnp.tanh(0.5 * x) + 1.0)


# ----------------------------------------------------------------------------
# Fused Pallas kernel: staggered 3-layer LSTM pipeline + FC + sigmoid
# ----------------------------------------------------------------------------
def _text_model_kernel(x_ref, w0_ref, b0_ref, w1_ref, b1_ref, w2_ref, b2_ref,
                       fcw_ref, fcb_ref, out_ref):
    """x_ref  : (T, B, In) f32 input sequence (time-major)
       w0_ref : (In+H, 4H) bf16  [W_ih0^T ; W_hh0^T], gate order [i,f,o,g]
       w1_ref : (2H, 4H)   bf16  [W_ih1^T ; W_hh1^T]
       w2_ref : (2H, 4H)   bf16  [W_ih2^T ; W_hh2^T]
       b*_ref : (1, 4H)    f32   b_ih + b_hh (permuted)
       fcw_ref: (T, 1, H)  f32   fc weight, fcw[t, 0, h] = fc_w[0, t*H + h]
       fcb_ref: (1, 1)     f32
       out_ref: (B, 1)     f32
    """
    T, B, _ = x_ref.shape
    H = HIDDEN

    # Loop-invariant bias loads hoisted out of the recurrence.
    b0 = b0_ref[...]
    b1 = b1_ref[...]
    b2 = b2_ref[...]

    def cell(gates, c):
        # Gate order [i, f, o, g]: one sigmoid over 3H lanes, one tanh over H.
        sig = _sigmoid(gates[:, : 3 * H])
        i_g = sig[:, 0 * H:1 * H]
        f_g = sig[:, 1 * H:2 * H]
        o_g = sig[:, 2 * H:3 * H]
        g_g = jnp.tanh(gates[:, 3 * H:])
        c_new = f_g * c + i_g * g_g
        h_new = o_g * jnp.tanh(c_new)
        return h_new, c_new

    def layer0(t, h0, c0):
        # Fused input+recurrent matmul, bf16 operands, f32 accumulation.
        lhs = jnp.concatenate([x_ref[t], h0], axis=-1).astype(jnp.bfloat16)
        g = jnp.dot(lhs, w0_ref[...], preferred_element_type=jnp.float32) + b0
        return cell(g, c0)

    def layer1(h_below, h1, c1):
        lhs = jnp.concatenate([h_below, h1], axis=-1).astype(jnp.bfloat16)
        g = jnp.dot(lhs, w1_ref[...], preferred_element_type=jnp.float32) + b1
        return cell(g, c1)

    def layer2(h_below, h2, c2):
        lhs = jnp.concatenate([h_below, h2], axis=-1).astype(jnp.bfloat16)
        g = jnp.dot(lhs, w2_ref[...], preferred_element_type=jnp.float32) + b2
        return cell(g, c2)

    zh = jnp.zeros((B, H), jnp.float32)

    # ---- pipeline fill (k = 0, 1) -------------------------------------------
    # k = 0 : layer0 @ t=0
    h0, c0 = layer0(0, zh, zh)
    # k = 1 : layer0 @ t=1 ; layer1 @ t=0 (consumes h0 from k=0)
    h0_prev = h0
    h0, c0 = layer0(1, h0, c0)
    h1, c1 = layer1(h0_prev, zh, zh)

    acc = jnp.zeros((B, H), jnp.float32)
    carry = (h0, c0, h1, c1, zh, zh, acc)

    # ---- steady state (k = 2 .. T-1) ----------------------------------------
    # Iteration k: layer0@t=k, layer1@t=k-1, layer2@t=k-2.  All three dots and
    # epilogues read only previous-iteration state -> independent MXU work.
    def step(k, carry):
        h0, c0, h1, c1, h2, c2, acc = carry
        h0n, c0n = layer0(k, h0, c0)          # layer0 @ t = k
        h1n, c1n = layer1(h0, h1, c1)         # layer1 @ t = k-1 (uses h0_{k-1})
        h2n, c2n = layer2(h1, h2, c2)         # layer2 @ t = k-2 (uses h1_{k-2})
        # Fused FC head: vector accumulator, off the h/c critical path.
        acc = acc + h2n * fcw_ref[k - 2]
        return (h0n, c0n, h1n, c1n, h2n, c2n, acc)

    n_main = T - 2
    n_blocks = n_main // UNROLL

    def block(b, carry):
        # Manual x-UNROLL for LLO scheduling visibility.
        for u in range(UNROLL):
            carry = step(2 + b * UNROLL + u, carry)
        return carry

    carry = lax.fori_loop(0, n_blocks, block, carry)
    for k in range(2 + n_blocks * UNROLL, T):     # remainder (empty when 4 | T-2)
        carry = step(k, carry)

    h0, c0, h1, c1, h2, c2, acc = carry

    # ---- pipeline drain (k = T, T+1) -----------------------------------------
    # k = T   : layer1 @ t=T-1 ; layer2 @ t=T-2
    h1n, c1n = layer1(h0, h1, c1)
    h2n, c2n = layer2(h1, h2, c2)
    acc = acc + h2n * fcw_ref[T - 2]
    # k = T+1 : layer2 @ t=T-1
    h2f, _ = layer2(h1n, h2n, c2n)
    acc = acc + h2f * fcw_ref[T - 1]

    # ---- FC reduce + bias + sigmoid ------------------------------------------
    z = jnp.sum(acc, axis=-1, keepdims=True) + fcb_ref[...]
    out_ref[...] = _sigmoid(z)


# ----------------------------------------------------------------------------
# pallas_call plumbing
# ----------------------------------------------------------------------------
def _full_spec(shape):
    nd = len(shape)
    return pl.BlockSpec(shape, lambda i, _nd=nd: (0,) * _nd)


def _fused_forward_pallas(x_tbi, packed):
    T, B, In = x_tbi.shape
    H = HIDDEN
    return pl.pallas_call(
        _text_model_kernel,
        out_shape=jax.ShapeDtypeStruct((B, 1), jnp.float32),
        grid=(1,),
        in_specs=[
            _full_spec((T, B, In)),           # x
            _full_spec((In + H, 4 * H)),      # w0 (bf16)
            _full_spec((1, 4 * H)),           # b0
            _full_spec((2 * H, 4 * H)),       # w1 (bf16)
            _full_spec((1, 4 * H)),           # b1
            _full_spec((2 * H, 4 * H)),       # w2 (bf16)
            _full_spec((1, 4 * H)),           # b2
            _full_spec((T, 1, H)),            # fc_w
            _full_spec((1, 1)),               # fc_b
        ],
        out_specs=_full_spec((B, 1)),
        compiler_params=pltpu.CompilerParams(
            dimension_semantics=("arbitrary",)),
    )(x_tbi, packed["w0"], packed["b0"],
      packed["w1"], packed["b1"],
      packed["w2"], packed["b2"],
      packed["fc_w"], packed["fc_b"])


@jax.jit
def text_model_forward(x, packed):
    """x: (B, T=70, 50) float32 -> (B, 1) float32."""
    x_tbi = jnp.transpose(x, (1, 0, 2))        # (T, B, In), time-major
    return _fused_forward_pallas(x_tbi, packed)


# ----------------------------------------------------------------------------
# Parameter init (PyTorch-style) and one-time packing (outside jit)
# ----------------------------------------------------------------------------
def init_params(key):
    params = {"lstm": []}
    k_lstm = 1.0 / jnp.sqrt(HIDDEN)
    for layer in range(NUM_LAYERS):
        in_sz = INPUT_SIZE if layer == 0 else HIDDEN
        key, k1, k2, k3, k4 = jax.random.split(key, 5)
        w_ih = jax.random.uniform(k1, (4 * HIDDEN, in_sz), jnp.float32, -k_lstm, k_lstm)
        w_hh = jax.random.uniform(k2, (4 * HIDDEN, HIDDEN), jnp.float32, -k_lstm, k_lstm)
        b_ih = jax.random.uniform(k3, (4 * HIDDEN,), jnp.float32, -k_lstm, k_lstm)
        b_hh = jax.random.uniform(k4, (4 * HIDDEN,), jnp.float32, -k_lstm, k_lstm)
        params["lstm"].append((w_ih, w_hh, b_ih, b_hh))

    d_fc = HIDDEN * SEQ_LEN
    k_fc = 1.0 / jnp.sqrt(d_fc)
    key, k1, k2 = jax.random.split(key, 3)
    params["fc_w"] = jax.random.uniform(k1, (1, d_fc), jnp.float32, -k_fc, k_fc)
    params["fc_b"] = jax.random.uniform(k2, (1,), jnp.float32, -k_fc, k_fc)
    return params


def prepare_params(params):
    """One-time packing: transpose, permute gates [i,f,g,o]->[i,f,o,g],
    fuse W_ih/W_hh per layer into one (K, 4H) bf16 weight, fold biases."""
    H = HIDDEN
    perm = jnp.concatenate([jnp.arange(0, 2 * H),        # i, f
                            jnp.arange(3 * H, 4 * H),    # o
                            jnp.arange(2 * H, 3 * H)])   # g
    lstm = params["lstm"]
    packed = {}
    for l in range(NUM_LAYERS):
        w_ih, w_hh, b_ih, b_hh = lstm[l]
        w = jnp.concatenate([jnp.transpose(w_ih),         # (In or H, 4H)
                             jnp.transpose(w_hh)], axis=0)[:, perm]
        packed[f"w{l}"] = w.astype(jnp.bfloat16)           # bf16 MXU operands
        packed[f"b{l}"] = (b_ih + b_hh)[perm][None, :].astype(jnp.float32)

    # fc_w[t, 0, h] multiplies h_t[:, h]; flat index of reference = t*H + h.
    packed["fc_w"] = params["fc_w"].reshape(SEQ_LEN, 1, HIDDEN)
    packed["fc_b"] = params["fc_b"].reshape(1, 1)
    return packed


# ----------------------------------------------------------------------------
# Pure-JAX reference (original, un-permuted f32 parameters)
# ----------------------------------------------------------------------------
def text_model_reference(x, params):
    h_seq = jnp.transpose(x, (1, 0, 2))
    B = x.shape[0]
    for (w_ih, w_hh, b_ih, b_hh) in params["lstm"]:
        H = HIDDEN
        b = b_ih + b_hh

        def step(carry, x_t, w_ih=w_ih, w_hh=w_hh, b=b, H=H):
            h, c = carry
            gates = (jnp.dot(x_t, w_ih.T, precision=lax.Precision.HIGHEST)
                     + jnp.dot(h, w_hh.T, precision=lax.Precision.HIGHEST) + b)
            i = jax.nn.sigmoid(gates[:, 0 * H:1 * H])
            f = jax.nn.sigmoid(gates[:, 1 * H:2 * H])
            g = jnp.tanh(gates[:, 2 * H:3 * H])
            o = jax.nn.sigmoid(gates[:, 3 * H:4 * H])
            c_new = f * c + i * g
            h_new = o * jnp.tanh(c_new)
            return (h_new, c_new), h_new

        init = (jnp.zeros((B, H), jnp.float32), jnp.zeros((B, H), jnp.float32))
        _, h_seq = lax.scan(step, init, h_seq)
    h = jnp.transpose(h_seq, (1, 0, 2)).reshape(B, -1)
    z = jnp.dot(h, params["fc_w"].T, precision=lax.Precision.HIGHEST) + params["fc_b"]
    return jax.nn.sigmoid(z)


# ----------------------------------------------------------------------------
if __name__ == "__main__":
    key = jax.random.PRNGKey(0)
    key, pkey, xkey = jax.random.split(key, 3)

    params = init_params(pkey)
    packed = prepare_params(params)          # one-time packing, outside jit
    x = jax.random.normal(xkey, (BATCH, SEQ_LEN, INPUT_SIZE), jnp.float32)

    out = text_model_forward(x, packed)
    out = jax.block_until_ready(out)
    assert out.shape == (BATCH, 1), out.shape

    ref = jax.block_until_ready(text_model_reference(x, params))
    max_diff = float(jnp.max(jnp.abs(out - ref)))
    assert jnp.allclose(out, ref, atol=2e-2, rtol=2e-2), (out, ref, max_diff)

    print("KERNEL_OK")
</pallas_src>

<mosaic_0001>
module attributes {stable_mosaic.version = 11 : i64} {
  func.func @_text_model_kernel(%arg0: i32, %arg1: memref<70x2x50xf32, #tpu.memory_space<vmem>>, %arg2: memref<114x256xbf16, #tpu.memory_space<vmem>>, %arg3: memref<1x256xf32, #tpu.memory_space<vmem>>, %arg4: memref<128x256xbf16, #tpu.memory_space<vmem>>, %arg5: memref<1x256xf32, #tpu.memory_space<vmem>>, %arg6: memref<128x256xbf16, #tpu.memory_space<vmem>>, %arg7: memref<1x256xf32, #tpu.memory_space<vmem>>, %arg8: memref<70x1x64xf32, #tpu.memory_space<vmem>>, %arg9: memref<1x1xf32, #tpu.memory_space<vmem>>, %arg10: memref<2x1xf32, #tpu.memory_space<vmem>>) attributes {dimension_semantics = [#tpu.dimension_semantics<arbitrary>], iteration_bounds = array<i64: 1>, scalar_prefetch = 0 : i64, scratch_operands = 0 : i64, tpu.core_type = #tpu.core_type<tc>, window_params = [{pipeline_mode = #tpu.pipeline_mode<synchronous>, transform_indices = @transform_0, window_bounds = array<i64: 70, 2, 50>}, {pipeline_mode = #tpu.pipeline_mode<synchronous>, transform_indices = @transform_1, window_bounds = array<i64: 114, 256>}, {pipeline_mode = #tpu.pipeline_mode<synchronous>, transform_indices = @transform_2, window_bounds = array<i64: 1, 256>}, {pipeline_mode = #tpu.pipeline_mode<synchronous>, transform_indices = @transform_3, window_bounds = array<i64: 128, 256>}, {pipeline_mode = #tpu.pipeline_mode<synchronous>, transform_indices = @transform_4, window_bounds = array<i64: 1, 256>}, {pipeline_mode = #tpu.pipeline_mode<synchronous>, transform_indices = @transform_5, window_bounds = array<i64: 128, 256>}, {pipeline_mode = #tpu.pipeline_mode<synchronous>, transform_indices = @transform_6, window_bounds = array<i64: 1, 256>}, {pipeline_mode = #tpu.pipeline_mode<synchronous>, transform_indices = @transform_7, window_bounds = array<i64: 70, 1, 64>}, {pipeline_mode = #tpu.pipeline_mode<synchronous>, transform_indices = @transform_8, window_bounds = array<i64: 1, 1>}, {pipeline_mode = #tpu.pipeline_mode<synchronous>, transform_indices = @transform_9, window_bounds = array<i64: 2, 1>}]} {
    %c0 = arith.constant 0 : index
    %c0_0 = arith.constant 0 : index
    %0 = vector.load %arg3[%c0, %c0_0] : memref<1x256xf32, #tpu.memory_space<vmem>>, vector<1x256xf32>
    %c0_1 = arith.constant 0 : index
    %c0_2 = arith.constant 0 : index
    %1 = vector.load %arg5[%c0_1, %c0_2] : memref<1x256xf32, #tpu.memory_space<vmem>>, vector<1x256xf32>
    %c0_3 = arith.constant 0 : index
    %c0_4 = arith.constant 0 : index
    %2 = vector.load %arg7[%c0_3, %c0_4] : memref<1x256xf32, #tpu.memory_space<vmem>>, vector<1x256xf32>
    %cst = arith.constant 0.000000e+00 : f32
    %3 = vector.broadcast %cst : f32 to vector<2x64xf32>
    %c0_5 = arith.constant 0 : index
    %c0_6 = arith.constant 0 : index
    %c0_7 = arith.constant 0 : index
    %4 = vector.load %arg1[%c0_5, %c0_6, %c0_7] : memref<70x2x50xf32, #tpu.memory_space<vmem>>, vector<1x2x50xf32>
    %5 = vector.shape_cast %4 : vector<1x2x50xf32> to vector<2x50xf32>
    %6 = tpu.concatenate %5, %3 in 1 : vector<2x50xf32>, vector<2x64xf32> -> vector<2x114xf32>
    %7 = arith.truncf %6 : vector<2x114xf32> to vector<2x114xbf16>
    %c0_8 = arith.constant 0 : index
    %c0_9 = arith.constant 0 : index
    %8 = vector.load %arg2[%c0_8, %c0_9] : memref<114x256xbf16, #tpu.memory_space<vmem>>, vector<114x256xbf16>
    %cst_10 = arith.constant dense<0.000000e+00> : vector<2x256xf32>
    %9 = tpu.matmul %7, %8, %cst_10 {dimension_numbers = #tpu.dot_dimension_numbers<[1], [0], [0], [1], [0, 0, 1, 1], [], []>} : vector<2x114xbf16>, vector<114x256xbf16>, vector<2x256xf32> -> vector<2x256xf32>
    %10 = vector.broadcast %0 : vector<1x256xf32> to vector<2x256xf32>
    %11 = arith.addf %9, %10 : vector<2x256xf32>
    %12 = vector.extract_strided_slice %11 {offsets = [0, 0], sizes = [2, 192], strides = [1, 1]} : vector<2x256xf32> to vector<2x192xf32>
    %cst_11 = arith.constant 5.000000e-01 : f32
    %13 = vector.broadcast %cst_11 : f32 to vector<2x192xf32>
    %14 = arith.mulf %13, %12 : vector<2x192xf32>
    %15 = math.tanh %14 : vector<2x192xf32>
    %cst_12 = arith.constant 1.000000e+00 : f32
    %16 = vector.broadcast %cst_12 : f32 to vector<2x192xf32>
    %17 = arith.addf %15, %16 : vector<2x192xf32>
    %cst_13 = arith.constant 5.000000e-01 : f32
    %18 = vector.broadcast %cst_13 : f32 to vector<2x192xf32>
    %19 = arith.mulf %18, %17 : vector<2x192xf32>
    %20 = vector.extract_strided_slice %19 {offsets = [0, 0], sizes = [2, 64], strides = [1, 1]} : vector<2x192xf32> to vector<2x64xf32>
    %21 = vector.extract_strided_slice %19 {offsets = [0, 64], sizes = [2, 64], strides = [1, 1]} : vector<2x192xf32> to vector<2x64xf32>
    %22 = vector.extract_strided_slice %19 {offsets = [0, 128], sizes = [2, 64], strides = [1, 1]} : vector<2x192xf32> to vector<2x64xf32>
    %23 = vector.extract_strided_slice %11 {offsets = [0, 192], sizes = [2, 64], strides = [1, 1]} : vector<2x256xf32> to vector<2x64xf32>
    %24 = math.tanh %23 : vector<2x64xf32>
    %25 = arith.mulf %21, %3 : vector<2x64xf32>
    %26 = arith.mulf %20, %24 : vector<2x64xf32>
    %27 = arith.addf %25, %26 : vector<2x64xf32>
    %28 = math.tanh %27 : vector<2x64xf32>
    %29 = arith.mulf %22, %28 : vector<2x64xf32>
    %c1 = arith.constant 1 : index
    %c0_14 = arith.constant 0 : index
    %c0_15 = arith.constant 0 : index
    %30 = vector.load %arg1[%c1, %c0_14, %c0_15] : memref<70x2x50xf32, #tpu.memory_space<vmem>>, vector<1x2x50xf32>
    %31 = vector.shape_cast %30 : vector<1x2x50xf32> to vector<2x50xf32>
    %32 = tpu.concatenate %31, %29 in 1 : vector<2x50xf32>, vector<2x64xf32> -> vector<2x114xf32>
    %33 = arith.truncf %32 : vector<2x114xf32> to vector<2x114xbf16>
    %c0_16 = arith.constant 0 : index
    %c0_17 = arith.constant 0 : index
    %34 = vector.load %arg2[%c0_16, %c0_17] : memref<114x256xbf16, #tpu.memory_space<vmem>>, vector<114x256xbf16>
    %cst_18 = arith.constant dense<0.000000e+00> : vector<2x256xf32>
    %35 = tpu.matmul %33, %34, %cst_18 {dimension_numbers = #tpu.dot_dimension_numbers<[1], [0], [0], [1], [0, 0, 1, 1], [], []>} : vector<2x114xbf16>, vector<114x256xbf16>, vector<2x256xf32> -> vector<2x256xf32>
    %36 = vector.broadcast %0 : vector<1x256xf32> to vector<2x256xf32>
    %37 = arith.addf %35, %36 : vector<2x256xf32>
    %38 = vector.extract_strided_slice %37 {offsets = [0, 0], sizes = [2, 192], strides = [1, 1]} : vector<2x256xf32> to vector<2x192xf32>
    %cst_19 = arith.constant 5.000000e-01 : f32
    %39 = vector.broadcast %cst_19 : f32 to vector<2x192xf32>
    %40 = arith.mulf %39, %38 : vector<2x192xf32>
    %41 = math.tanh %40 : vector<2x192xf32>
    %cst_20 = arith.constant 1.000000e+00 : f32
    %42 = vector.broadcast %cst_20 : f32 to vector<2x192xf32>
    %43 = arith.addf %41, %42 : vector<2x192xf32>
    %cst_21 = arith.constant 5.000000e-01 : f32
    %44 = vector.broadcast %cst_21 : f32 to vector<2x192xf32>
    %45 = arith.mulf %44, %43 : vector<2x192xf32>
    %46 = vector.extract_strided_slice %45 {offsets = [0, 0], sizes = [2, 64], strides = [1, 1]} : vector<2x192xf32> to vector<2x64xf32>
    %47 = vector.extract_strided_slice %45 {offsets = [0, 64], sizes = [2, 64], strides = [1, 1]} : vector<2x192xf32> to vector<2x64xf32>
    %48 = vector.extract_strided_slice %45 {offsets = [0, 128], sizes = [2, 64], strides = [1, 1]} : vector<2x192xf32> to vector<2x64xf32>
    %49 = vector.extract_strided_slice %37 {offsets = [0, 192], sizes = [2, 64], strides = [1, 1]} : vector<2x256xf32> to vector<2x64xf32>
    %50 = math.tanh %49 : vector<2x64xf32>
    %51 = arith.mulf %47, %27 : vector<2x64xf32>
    %52 = arith.mulf %46, %50 : vector<2x64xf32>
    %53 = arith.addf %51, %52 : vector<2x64xf32>
    %54 = math.tanh %53 : vector<2x64xf32>
    %55 = arith.mulf %48, %54 : vector<2x64xf32>
    %56 = tpu.concatenate %29, %3 in 1 : vector<2x64xf32>, vector<2x64xf32> -> vector<2x128xf32>
    %57 = arith.truncf %56 : vector<2x128xf32> to vector<2x128xbf16>
    %c0_22 = arith.constant 0 : index
    %c0_23 = arith.constant 0 : index
    %58 = vector.load %arg4[%c0_22, %c0_23] : memref<128x256xbf16, #tpu.memory_space<vmem>>, vector<128x256xbf16>
    %cst_24 = arith.constant dense<0.000000e+00> : vector<2x256xf32>
    %59 = tpu.matmul %57, %58, %cst_24 {dimension_numbers = #tpu.dot_dimension_numbers<[1], [0], [0], [1], [0, 0, 1, 1], [], []>} : vector<2x128xbf16>, vector<128x256xbf16>, vector<2x256xf32> -> vector<2x256xf32>
    %60 = vector.broadcast %1 : vector<1x256xf32> to vector<2x256xf32>
    %61 = arith.addf %59, %60 : vector<2x256xf32>
    %62 = vector.extract_strided_slice %61 {offsets = [0, 0], sizes = [2, 192], strides = [1, 1]} : vector<2x256xf32> to vector<2x192xf32>
    %cst_25 = arith.constant 5.000000e-01 : f32
    %63 = vector.broadcast %cst_25 : f32 to vector<2x192xf32>
    %64 = arith.mulf %63, %62 : vector<2x192xf32>
    %65 = math.tanh %64 : vector<2x192xf32>
    %cst_26 = arith.constant 1.000000e+00 : f32
    %66 = vector.broadcast %cst_26 : f32 to vector<2x192xf32>
    %67 = arith.addf %65, %66 : vector<2x192xf32>
    %cst_27 = arith.constant 5.000000e-01 : f32
    %68 = vector.broadcast %cst_27 : f32 to vector<2x192xf32>
    %69 = arith.mulf %68, %67 : vector<2x192xf32>
    %70 = vector.extract_strided_slice %69 {offsets = [0, 0], sizes = [2, 64], strides = [1, 1]} : vector<2x192xf32> to vector<2x64xf32>
    %71 = vector.extract_strided_slice %69 {offsets = [0, 64], sizes = [2, 64], strides = [1, 1]} : vector<2x192xf32> to vector<2x64xf32>
    %72 = vector.extract_strided_slice %69 {offsets = [0, 128], sizes = [2, 64], strides = [1, 1]} : vector<2x192xf32> to vector<2x64xf32>
    %73 = vector.extract_strided_slice %61 {offsets = [0, 192], sizes = [2, 64], strides = [1, 1]} : vector<2x256xf32> to vector<2x64xf32>
    %74 = math.tanh %73 : vector<2x64xf32>
    %75 = arith.mulf %71, %3 : vector<2x64xf32>
    %76 = arith.mulf %70, %74 : vector<2x64xf32>
    %77 = arith.addf %75, %76 : vector<2x64xf32>
    %78 = math.tanh %77 : vector<2x64xf32>
    %79 = arith.mulf %72, %78 : vector<2x64xf32>
    %cst_28 = arith.constant 0.000000e+00 : f32
    %80 = vector.broadcast %cst_28 : f32 to vector<2x64xf32>
    %c0_i32 = arith.constant 0 : i32
    %c17_i32 = arith.constant 17 : i32
    %81 = arith.addi %c0_i32, %c17_i32 : i32
    %c1_i32 = arith.constant 1 : i32
    %82:7 = scf.for %arg11 = %c0_i32 to %81 step %c1_i32 iter_args(%arg12 = %55, %arg13 = %53, %arg14 = %79, %arg15 = %77, %arg16 = %3, %arg17 = %3, %arg18 = %80) -> (vector<2x64xf32>, vector<2x64xf32>, vector<2x64xf32>, vector<2x64xf32>, vector<2x64xf32>, vector<2x64xf32>, vector<2x64xf32>)  : i32 {
      %c4_i32 = arith.constant 4 : i32
      %178 = arith.muli %arg11, %c4_i32 : i32
      %c2_i32 = arith.constant 2 : i32
      %179 = arith.addi %c2_i32, %178 : i32
      %c0_i32_60 = arith.constant 0 : i32
      %180 = arith.addi %179, %c0_i32_60 : i32
      %181 = arith.index_cast %180 : i32 to index
      %c0_61 = arith.constant 0 : index
      %c0_62 = arith.constant 0 : index
      %182 = vector.load %arg1[%181, %c0_61, %c0_62] : memref<70x2x50xf32, #tpu.memory_space<vmem>>, vector<1x2x50xf32>
      %183 = vector.shape_cast %182 : vector<1x2x50xf32> to vector<2x50xf32>
      %184 = tpu.concatenate %183, %arg12 in 1 : vector<2x50xf32>, vector<2x64xf32> -> vector<2x114xf32>
      %185 = arith.truncf %184 : vector<2x114xf32> to vector<2x114xbf16>
      %c0_63 = arith.constant 0 : index
      %c0_64 = arith.constant 0 : index
      %186 = vector.load %arg2[%c0_63, %c0_64] : memref<114x256xbf16, #tpu.memory_space<vmem>>, vector<114x256xbf16>
      %cst_65 = arith.constant dense<0.000000e+00> : vector<2x256xf32>
      %187 = tpu.matmul %185, %186, %cst_65 {dimension_numbers = #tpu.dot_dimension_numbers<[1], [0], [0], [1], [0, 0, 1, 1], [], []>} : vector<2x114xbf16>, vector<114x256xbf16>, vector<2x256xf32> -> vector<2x256xf32>
      %188 = vector.broadcast %0 : vector<1x256xf32> to vector<2x256xf32>
      %189 = arith.addf %187, %188 : vector<2x256xf32>
      %190 = vector.extract_strided_slice %189 {offsets = [0, 0], sizes = [2, 192], strides = [1, 1]} : vector<2x256xf32> to vector<2x192xf32>
      %cst_66 = arith.constant 5.000000e-01 : f32
      %191 = vector.broadcast %cst_66 : f32 to vector<2x192xf32>
      %192 = arith.mulf %191, %190 : vector<2x192xf32>
      %193 = math.tanh %192 : vector<2x192xf32>
      %cst_67 = arith.constant 1.000000e+00 : f32
      %194 = vector.broadcast %cst_67 : f32 to vector<2x192xf32>
      %195 = arith.addf %193, %194 : vector<2x192xf32>
      %cst_68 = arith.constant 5.000000e-01 : f32
      %196 = vector.broadcast %cst_68 : f32 to vector<2x192xf32>
      %197 = arith.mulf %196, %195 : vector<2x192xf32>
      %198 = vector.extract_strided_slice %197 {offsets = [0, 0], sizes = [2, 64], strides = [1, 1]} : vector<2x192xf32> to vector<2x64xf32>
      %199 = vector.extract_strided_slice %197 {offsets = [0, 64], sizes = [2, 64], strides = [1, 1]} : vector<2x192xf32> to vector<2x64xf32>
      %200 = vector.extract_strided_slice %197 {offsets = [0, 128], sizes = [2, 64], strides = [1, 1]} : vector<2x192xf32> to vector<2x64xf32>
      %201 = vector.extract_strided_slice %189 {offsets = [0, 192], sizes = [2, 64], strides = [1, 1]} : vector<2x256xf32> to vector<2x64xf32>
      %202 = math.tanh %201 : vector<2x64xf32>
      %203 = arith.mulf %199, %arg13 : vector<2x64xf32>
      %204 = arith.mulf %198, %202 : vector<2x64xf32>
      %205 = arith.addf %203, %204 : vector<2x64xf32>
      %206 = math.tanh %205 : vector<2x64xf32>
      %207 = arith.mulf %200, %206 : vector<2x64xf32>
      %208 = tpu.concatenate %arg12, %arg14 in 1 : vector<2x64xf32>, vector<2x64xf32> -> vector<2x128xf32>
      %209 = arith.truncf %208 : vector<2x128xf32> to vector<2x128xbf16>
      %c0_69 = arith.constant 0 : index
      %c0_70 = arith.constant 0 : index
      %210 = vector.load %arg4[%c0_69, %c0_70] : memref<128x256xbf16, #tpu.memory_space<vmem>>, vector<128x256xbf16>
      %cst_71 = arith.constant dense<0.000000e+00> : vector<2x256xf32>
      %211 = tpu.matmul %209, %210, %cst_71 {dimension_numbers = #tpu.dot_dimension_numbers<[1], [0], [0], [1], [0, 0, 1, 1], [], []>} : vector<2x128xbf16>, vector<128x256xbf16>, vector<2x256xf32> -> vector<2x256xf32>
      %212 = vector.broadcast %1 : vector<1x256xf32> to vector<2x256xf32>
      %213 = arith.addf %211, %212 : vector<2x256xf32>
      %214 = vector.extract_strided_slice %213 {offsets = [0, 0], sizes = [2, 192], strides = [1, 1]} : vector<2x256xf32> to vector<2x192xf32>
      %cst_72 = arith.constant 5.000000e-01 : f32
      %215 = vector.broadcast %cst_72 : f32 to vector<2x192xf32>
      %216 = arith.mulf %215, %214 : vector<2x192xf32>
      %217 = math.tanh %216 : vector<2x192xf32>
      %cst_73 = arith.constant 1.000000e+00 : f32
      %218 = vector.broadcast %cst_73 : f32 to vector<2x192xf32>
      %219 = arith.addf %217, %218 : vector<2x192xf32>
      %cst_74 = arith.constant 5.000000e-01 : f32
      %220 = vector.broadcast %cst_74 : f32 to vector<2x192xf32>
      %221 = arith.mulf %220, %219 : vector<2x192xf32>
      %222 = vector.extract_strided_slice %221 {offsets = [0, 0], sizes = [2, 64], strides = [1, 1]} : vector<2x192xf32> to vector<2x64xf32>
      %223 = vector.extract_strided_slice %221 {offsets = [0, 64], sizes = [2, 64], strides = [1, 1]} : vector<2x192xf32> to vector<2x64xf32>
      %224 = vector.extract_strided_slice %221 {offsets = [0, 128], sizes = [2, 64], strides = [1, 1]} : vector<2x192xf32> to vector<2x64xf32>
      %225 = vector.extract_strided_slice %213 {offsets = [0, 192], sizes = [2, 64], strides = [1, 1]} : vector<2x256xf32> to vector<2x64xf32>
      %226 = math.tanh %225 : vector<2x64xf32>
      %227 = arith.mulf %223, %arg15 : vector<2x64xf32>
      %228 = arith.mulf %222, %226 : vector<2x64xf32>
      %229 = arith.addf %227, %228 : vector<2x64xf32>
      %230 = math.tanh %229 : vector<2x64xf32>
      %231 = arith.mulf %224, %230 : vector<2x64xf32>
      %232 = tpu.concatenate %arg14, %arg16 in 1 : vector<2x64xf32>, vector<2x64xf32> -> vector<2x128xf32>
      %233 = arith.truncf %232 : vector<2x128xf32> to vector<2x128xbf16>
      %c0_75 = arith.constant 0 : index
      %c0_76 = arith.constant 0 : index
      %234 = vector.load %arg6[%c0_75, %c0_76] : memref<128x256xbf16, #tpu.memory_space<vmem>>, vector<128x256xbf16>
      %cst_77 = arith.constant dense<0.000000e+00> : vector<2x256xf32>
      %235 = tpu.matmul %233, %234, %cst_77 {dimension_numbers = #tpu.dot_dimension_numbers<[1], [0], [0], [1], [0, 0, 1, 1], [], []>} : vector<2x128xbf16>, vector<128x256xbf16>, vector<2x256xf32> -> vector<2x256xf32>
      %236 = vector.broadcast %2 : vector<1x256xf32> to vector<2x256xf32>
      %237 = arith.addf %235, %236 : vector<2x256xf32>
      %238 = vector.extract_strided_slice %237 {offsets = [0, 0], sizes = [2, 192], strides = [1, 1]} : vector<2x256xf32> to vector<2x192xf32>
      %cst_78 = arith.constant 5.000000e-01 : f32
      %239 = vector.broadcast %cst_78 : f32 to vector<2x192xf32>
      %240 = arith.mulf %239, %238 : vector<2x192xf32>
      %241 = math.tanh %240 : vector<2x192xf32>
      %cst_79 = arith.constant 1.000000e+00 : f32
      %242 = vector.broadcast %cst_79 : f32 to vector<2x192xf32>
      %243 = arith.addf %241, %242 : vector<2x192xf32>
      %cst_80 = arith.constant 5.000000e-01 : f32
      %244 = vector.broadcast %cst_80 : f32 to vector<2x192xf32>
      %245 = arith.mulf %244, %243 : vector<2x192xf32>
      %246 = vector.extract_strided_slice %245 {offsets = [0, 0], sizes = [2, 64], strides = [1, 1]} : vector<2x192xf32> to vector<2x64xf32>
      %247 = vector.extract_strided_slice %245 {offsets = [0, 64], sizes = [2, 64], strides = [1, 1]} : vector<2x192xf32> to vector<2x64xf32>
      %248 = vector.extract_strided_slice %245 {offsets = [0, 128], sizes = [2, 64], strides = [1, 1]} : vector<2x192xf32> to vector<2x64xf32>
      %249 = vector.extract_strided_slice %237 {offsets = [0, 192], sizes = [2, 64], strides = [1, 1]} : vector<2x256xf32> to vector<2x64xf32>
      %250 = math.tanh %249 : vector<2x64xf32>
      %251 = arith.mulf %247, %arg17 : vector<2x64xf32>
      %252 = arith.mulf %246, %250 : vector<2x64xf32>
      %253 = arith.addf %251, %252 : vector<2x64xf32>
      %254 = math.tanh %253 : vector<2x64xf32>
      %255 = arith.mulf %248, %254 : vector<2x64xf32>
      %c2_i32_81 = arith.constant 2 : i32
      %256 = arith.subi %180, %c2_i32_81 : i32
      %257 = arith.index_cast %256 : i32 to index
      %c0_82 = arith.constant 0 : index
      %c0_83 = arith.constant 0 : index
      %258 = vector.load %arg8[%257, %c0_82, %c0_83] : memref<70x1x64xf32, #tpu.memory_space<vmem>>, vector<1x1x64xf32>
      %259 = vector.shape_cast %258 : vector<1x1x64xf32> to vector<1x64xf32>
      %260 = vector.broadcast %259 : vector<1x64xf32> to vector<2x64xf32>
      %261 = arith.mulf %255, %260 : vector<2x64xf32>
      %262 = arith.addf %arg18, %261 : vector<2x64xf32>
      %c4_i32_84 = arith.constant 4 : i32
      %263 = arith.muli %arg11, %c4_i32_84 : i32
      %c2_i32_85 = arith.constant 2 : i32
      %264 = arith.addi %c2_i32_85, %263 : i32
      %c1_i32_86 = arith.constant 1 : i32
      %265 = arith.addi %264, %c1_i32_86 : i32
      %266 = arith.index_cast %265 : i32 to index
      %c0_87 = arith.constant 0 : index
      %c0_88 = arith.constant 0 : index
      %267 = vector.load %arg1[%266, %c0_87, %c0_88] : memref<70x2x50xf32, #tpu.memory_space<vmem>>, vector<1x2x50xf32>
      %268 = vector.shape_cast %267 : vector<1x2x50xf32> to vector<2x50xf32>
      %269 = tpu.concatenate %268, %207 in 1 : vector<2x50xf32>, vector<2x64xf32> -> vector<2x114xf32>
      %270 = arith.truncf %269 : vector<2x114xf32> to vector<2x114xbf16>
      %c0_89 = arith.constant 0 : index
      %c0_90 = arith.constant 0 : index
      %271 = vector.load %arg2[%c0_89, %c0_90] : memref<114x256xbf16, #tpu.memory_space<vmem>>, vector<114x256xbf16>
      %cst_91 = arith.constant dense<0.000000e+00> : vector<2x256xf32>
      %272 = tpu.matmul %270, %271, %cst_91 {dimension_numbers = #tpu.dot_dimension_numbers<[1], [0], [0], [1], [0, 0, 1, 1], [], []>} : vector<2x114xbf16>, vector<114x256xbf16>, vector<2x256xf32> -> vector<2x256xf32>
      %273 = vector.broadcast %0 : vector<1x256xf32> to vector<2x256xf32>
      %274 = arith.addf %272, %273 : vector<2x256xf32>
      %275 = vector.extract_strided_slice %274 {offsets = [0, 0], sizes = [2, 192], strides = [1, 1]} : vector<2x256xf32> to vector<2x192xf32>
      %cst_92 = arith.constant 5.000000e-01 : f32
      %276 = vector.broadcast %cst_92 : f32 to vector<2x192xf32>
      %277 = arith.mulf %276, %275 : vector<2x192xf32>
      %278 = math.tanh %277 : vector<2x192xf32>
      %cst_93 = arith.constant 1.000000e+00 : f32
      %279 = vector.broadcast %cst_93 : f32 to vector<2x192xf32>
      %280 = arith.addf %278, %279 : vector<2x192xf32>
      %cst_94 = arith.constant 5.000000e-01 : f32
      %281 = vector.broadcast %cst_94 : f32 to vector<2x192xf32>
      %282 = arith.mulf %281, %280 : vector<2x192xf32>
      %283 = vector.extract_strided_slice %282 {offsets = [0, 0], sizes = [2, 64], strides = [1, 1]} : vector<2x192xf32> to vector<2x64xf32>
      %284 = vector.extract_strided_slice %282 {offsets = [0, 64], sizes = [2, 64], strides = [1, 1]} : vector<2x192xf32> to vector<2x64xf32>
      %285 = vector.extract_strided_slice %282 {offsets = [0, 128], sizes = [2, 64], strides = [1, 1]} : vector<2x192xf32> to vector<2x64xf32>
      %286 = vector.extract_strided_slice %274 {offsets = [0, 192], sizes = [2, 64], strides = [1, 1]} : vector<2x256xf32> to vector<2x64xf32>
      %287 = math.tanh %286 : vector<2x64xf32>
      %288 = arith.mulf %284, %205 : vector<2x64xf32>
      %289 = arith.mulf %283, %287 : vector<2x64xf32>
      %290 = arith.addf %288, %289 : vector<2x64xf32>
      %291 = math.tanh %290 : vector<2x64xf32>
      %292 = arith.mulf %285, %291 : vector<2x64xf32>
      %293 = tpu.concatenate %207, %231 in 1 : vector<2x64xf32>, vector<2x64xf32> -> vector<2x128xf32>
      %294 = arith.truncf %293 : vector<2x128xf32> to vector<2x128xbf16>
      %c0_95 = arith.constant 0 : index
      %c0_96 = arith.constant 0 : index
      %295 = vector.load %arg4[%c0_95, %c0_96] : memref<128x256xbf16, #tpu.memory_space<vmem>>, vector<128x256xbf16>
      %cst_97 = arith.constant dense<0.000000e+00> : vector<2x256xf32>
      %296 = tpu.matmul %294, %295, %cst_97 {dimension_numbers = #tpu.dot_dimension_numbers<[1], [0], [0], [1], [0, 0, 1, 1], [], []>} : vector<2x128xbf16>, vector<128x256xbf16>, vector<2x256xf32> -> vector<2x256xf32>
      %297 = vector.broadcast %1 : vector<1x256xf32> to vector<2x256xf32>
      %298 = arith.addf %296, %297 : vector<2x256xf32>
      %299 = vector.extract_strided_slice %298 {offsets = [0, 0], sizes = [2, 192], strides = [1, 1]} : vector<2x256xf32> to vector<2x192xf32>
      %cst_98 = arith.constant 5.000000e-01 : f32
      %300 = vector.broadcast %cst_98 : f32 to vector<2x192xf32>
      %301 = arith.mulf %300, %299 : vector<2x192xf32>
      %302 = math.tanh %301 : vector<2x192xf32>
      %cst_99 = arith.constant 1.000000e+00 : f32
      %303 = vector.broadcast %cst_99 : f32 to vector<2x192xf32>
      %304 = arith.addf %302, %303 : vector<2x192xf32>
      %cst_100 = arith.constant 5.000000e-01 : f32
      %305 = vector.broadcast %cst_100 : f32 to vector<2x192xf32>
      %306 = arith.mulf %305, %304 : vector<2x192xf32>
      %307 = vector.extract_strided_slice %306 {offsets = [0, 0], sizes = [2, 64], strides = [1, 1]} : vector<2x192xf32> to vector<2x64xf32>
      %308 = vector.extract_strided_slice %306 {offsets = [0, 64], sizes = [2, 64], strides = [1, 1]} : vector<2x192xf32> to vector<2x64xf32>
      %309 = vector.extract_strided_slice %306 {offsets = [0, 128], sizes = [2, 64], strides = [1, 1]} : vector<2x192xf32> to vector<2x64xf32>
      %310 = vector.extract_strided_slice %298 {offsets = [0, 192], sizes = [2, 64], strides = [1, 1]} : vector<2x256xf32> to vector<2x64xf32>
      %311 = math.tanh %310 : vector<2x64xf32>
      %312 = arith.mulf %308, %229 : vector<2x64xf32>
      %313 = arith.mulf %307, %311 : vector<2x64xf32>
      %314 = arith.addf %312, %313 : vector<2x64xf32>
      %315 = math.tanh %314 : vector<2x64xf32>
      %316 = arith.mulf %309, %315 : vector<2x64xf32>
      %317 = tpu.concatenate %231, %255 in 1 : vector<2x64xf32>, vector<2x64xf32> -> vector<2x128xf32>
      %318 = arith.truncf %317 : vector<2x128xf32> to vector<2x128xbf16>
      %c0_101 = arith.constant 0 : index
      %c0_102 = arith.constant 0 : index
      %319 = vector.load %arg6[%c0_101, %c0_102] : memref<128x256xbf16, #tpu.memory_space<vmem>>, vector<128x256xbf16>
      %cst_103 = arith.constant dense<0.000000e+00> : vector<2x256xf32>
      %320 = tpu.matmul %318, %319, %cst_103 {dimension_numbers = #tpu.dot_dimension_numbers<[1], [0], [0], [1], [0, 0, 1, 1], [], []>} : vector<2x128xbf16>, vector<128x256xbf16>, vector<2x256xf32> -> vector<2x256xf32>
      %321 = vector.broadcast %2 : vector<1x256xf32> to vector<2x256xf32>
      %322 = arith.addf %320, %321 : vector<2x256xf32>
      %323 = vector.extract_strided_slice %322 {offsets = [0, 0], sizes = [2, 192], strides = [1, 1]} : vector<2x256xf32> to vector<2x192xf32>
      %cst_104 = arith.constant 5.000000e-01 : f32
      %324 = vector.broadcast %cst_104 : f32 to vector<2x192xf32>
      %325 = arith.mulf %324, %323 : vector<2x192xf32>
      %326 = math.tanh %325 : vector<2x192xf32>
      %cst_105 = arith.constant 1.000000e+00 : f32
      %327 = vector.broadcast %cst_105 : f32 to vector<2x192xf32>
      %328 = arith.addf %326, %327 : vector<2x192xf32>
      %cst_106 = arith.constant 5.000000e-01 : f32
      %329 = vector.broadcast %cst_106 : f32 to vector<2x192xf32>
      %330 = arith.mulf %329, %328 : vector<2x192xf32>
      %331 = vector.extract_strided_slice %330 {offsets = [0, 0], sizes = [2, 64], strides = [1, 1]} : vector<2x192xf32> to vector<2x64xf32>
      %332 = vector.extract_strided_slice %330 {offsets = [0, 64], sizes = [2, 64], strides = [1, 1]} : vector<2x192xf32> to vector<2x64xf32>
      %333 = vector.extract_strided_slice %330 {offsets = [0, 128], sizes = [2, 64], strides = [1, 1]} : vector<2x192xf32> to vector<2x64xf32>
      %334 = vector.extract_strided_slice %322 {offsets = [0, 192], sizes = [2, 64], strides = [1, 1]} : vector<2x256xf32> to vector<2x64xf32>
      %335 = math.tanh %334 : vector<2x64xf32>
      %336 = arith.mulf %332, %253 : vector<2x64xf32>
      %337 = arith.mulf %331, %335 : vector<2x64xf32>
      %338 = arith.addf %336, %337 : vector<2x64xf32>
      %339 = math.tanh %338 : vector<2x64xf32>
      %340 = arith.mulf %333, %339 : vector<2x64xf32>
      %c2_i32_107 = arith.constant 2 : i32
      %341 = arith.subi %265, %c2_i32_107 : i32
      %342 = arith.index_cast %341 : i32 to index
      %c0_108 = arith.constant 0 : index
      %c0_109 = arith.constant 0 : index
      %343 = vector.load %arg8[%342, %c0_108, %c0_109] : memref<70x1x64xf32, #tpu.memory_space<vmem>>, vector<1x1x64xf32>
      %344 = vector.shape_cast %343 : vector<1x1x64xf32> to vector<1x64xf32>
      %345 = vector.broadcast %344 : vector<1x64xf32> to vector<2x64xf32>
      %346 = arith.mulf %340, %345 : vector<2x64xf32>
      %347 = arith.addf %262, %346 : vector<2x64xf32>
      %c4_i32_110 = arith.constant 4 : i32
      %348 = arith.muli %arg11, %c4_i32_110 : i32
      %c2_i32_111 = arith.constant 2 : i32
      %349 = arith.addi %c2_i32_111, %348 : i32
      %c2_i32_112 = arith.constant 2 : i32
      %350 = arith.addi %349, %c2_i32_112 : i32
      %351 = arith.index_cast %350 : i32 to index
      %c0_113 = arith.constant 0 : index
      %c0_114 = arith.constant 0 : index
      %352 = vector.load %arg1[%351, %c0_113, %c0_114] : memref<70x2x50xf32, #tpu.memory_space<vmem>>, vector<1x2x50xf32>
      %353 = vector.shape_cast %352 : vector<1x2x50xf32> to vector<2x50xf32>
      %354 = tpu.concatenate %353, %292 in 1 : vector<2x50xf32>, vector<2x64xf32> -> vector<2x114xf32>
      %355 = arith.truncf %354 : vector<2x114xf32> to vector<2x114xbf16>
      %c0_115 = arith.constant 0 : index
      %c0_116 = arith.constant 0 : index
      %356 = vector.load %arg2[%c0_115, %c0_116] : memref<114x256xbf16, #tpu.memory_space<vmem>>, vector<114x256xbf16>
      %cst_117 = arith.constant dense<0.000000e+00> : vector<2x256xf32>
      %357 = tpu.matmul %355, %356, %cst_117 {dimension_numbers = #tpu.dot_dimension_numbers<[1], [0], [0], [1], [0, 0, 1, 1], [], []>} : vector<2x114xbf16>, vector<114x256xbf16>, vector<2x256xf32> -> vector<2x256xf32>
      %358 = vector.broadcast %0 : vector<1x256xf32> to vector<2x256xf32>
      %359 = arith.addf %357, %358 : vector<2x256xf32>
      %360 = vector.extract_strided_slice %359 {offsets = [0, 0], sizes = [2, 192], strides = [1, 1]} : vector<2x256xf32> to vector<2x192xf32>
      %cst_118 = arith.constant 5.000000e-01 : f32
      %361 = vector.broadcast %cst_118 : f32 to vector<2x192xf32>
      %362 = arith.mulf %361, %360 : vector<2x192xf32>
      %363 = math.tanh %362 : vector<2x192xf32>
      %cst_119 = arith.constant 1.000000e+00 : f32
      %364 = vector.broadcast %cst_119 : f32 to vector<2x192xf32>
      %365 = arith.addf %363, %364 : vector<2x192xf32>
      %cst_120 = arith.constant 5.000000e-01 : f32
      %366 = vector.broadcast %cst_120 : f32 to vector<2x192xf32>
      %367 = arith.mulf %366, %365 : vector<2x192xf32>
      %368 = vector.extract_strided_slice %367 {offsets = [0, 0], sizes = [2, 64], strides = [1, 1]} : vector<2x192xf32> to vector<2x64xf32>
      %369 = vector.extract_strided_slice %367 {offsets = [0, 64], sizes = [2, 64], strides = [1, 1]} : vector<2x192xf32> to vector<2x64xf32>
      %370 = vector.extract_strided_slice %367 {offsets = [0, 128], sizes = [2, 64], strides = [1, 1]} : vector<2x192xf32> to vector<2x64xf32>
      %371 = vector.extract_strided_slice %359 {offsets = [0, 192], sizes = [2, 64], strides = [1, 1]} : vector<2x256xf32> to vector<2x64xf32>
      %372 = math.tanh %371 : vector<2x64xf32>
      %373 = arith.mulf %369, %290 : vector<2x64xf32>
      %374 = arith.mulf %368, %372 : vector<2x64xf32>
      %375 = arith.addf %373, %374 : vector<2x64xf32>
      %376 = math.tanh %375 : vector<2x64xf32>
      %377 = arith.mulf %370, %376 : vector<2x64xf32>
      %378 = tpu.concatenate %292, %316 in 1 : vector<2x64xf32>, vector<2x64xf32> -> vector<2x128xf32>
      %379 = arith.truncf %378 : vector<2x128xf32> to vector<2x128xbf16>
      %c0_121 = arith.constant 0 : index
      %c0_122 = arith.constant 0 : index
      %380 = vector.load %arg4[%c0_121, %c0_122] : memref<128x256xbf16, #tpu.memory_space<vmem>>, vector<128x256xbf16>
      %cst_123 = arith.constant dense<0.000000e+00> : vector<2x256xf32>
      %381 = tpu.matmul %379, %380, %cst_123 {dimension_numbers = #tpu.dot_dimension_numbers<[1], [0], [0], [1], [0, 0, 1, 1], [], []>} : vector<2x128xbf16>, vector<128x256xbf16>, vector<2x256xf32> -> vector<2x256xf32>
      %382 = vector.broadcast %1 : vector<1x256xf32> to vector<2x256xf32>
      %383 = arith.addf %381, %382 : vector<2x256xf32>
      %384 = vector.extract_strided_slice %383 {offsets = [0, 0], sizes = [2, 192], strides = [1, 1]} : vector<2x256xf32> to vector<2x192xf32>
      %cst_124 = arith.constant 5.000000e-01 : f32
      %385 = vector.broadcast %cst_124 : f32 to vector<2x192xf32>
      %386 = arith.mulf %385, %384 : vector<2x192xf32>
      %387 = math.tanh %386 : vector<2x192xf32>
      %cst_125 = arith.constant 1.000000e+00 : f32
      %388 = vector.broadcast %cst_125 : f32 to vector<2x192xf32>
      %389 = arith.addf %387, %388 : vector<2x192xf32>
      %cst_126 = arith.constant 5.000000e-01 : f32
      %390 = vector.broadcast %cst_126 : f32 to vector<2x192xf32>
      %391 = arith.mulf %390, %389 : vector<2x192xf32>
      %392 = vector.extract_strided_slice %391 {offsets = [0, 0], sizes = [2, 64], strides = [1, 1]} : vector<2x192xf32> to vector<2x64xf32>
      %393 = vector.extract_strided_slice %391 {offsets = [0, 64], sizes = [2, 64], strides = [1, 1]} : vector<2x192xf32> to vector<2x64xf32>
      %394 = vector.extract_strided_slice %391 {offsets = [0, 128], sizes = [2, 64], strides = [1, 1]} : vector<2x192xf32> to vector<2x64xf32>
      %395 = vector.extract_strided_slice %383 {offsets = [0, 192], sizes = [2, 64], strides = [1, 1]} : vector<2x256xf32> to vector<2x64xf32>
      %396 = math.tanh %395 : vector<2x64xf32>
      %397 = arith.mulf %393, %314 : vector<2x64xf32>
      %398 = arith.mulf %392, %396 : vector<2x64xf32>
      %399 = arith.addf %397, %398 : vector<2x64xf32>
      %400 = math.tanh %399 : vector<2x64xf32>
      %401 = arith.mulf %394, %400 : vector<2x64xf32>
      %402 = tpu.concatenate %316, %340 in 1 : vector<2x64xf32>, vector<2x64xf32> -> vector<2x128xf32>
      %403 = arith.truncf %402 : vector<2x128xf32> to vector<2x128xbf16>
      %c0_127 = arith.constant 0 : index
      %c0_128 = arith.constant 0 : index
      %404 = vector.load %arg6[%c0_127, %c0_128] : memref<128x256xbf16, #tpu.memory_space<vmem>>, vector<128x256xbf16>
      %cst_129 = arith.constant dense<0.000000e+00> : vector<2x256xf32>
      %405 = tpu.matmul %403, %404, %cst_129 {dimension_numbers = #tpu.dot_dimension_numbers<[1], [0], [0], [1], [0, 0, 1, 1], [], []>} : vector<2x128xbf16>, vector<128x256xbf16>, vector<2x256xf32> -> vector<2x256xf32>
      %406 = vector.broadcast %2 : vector<1x256xf32> to vector<2x256xf32>
      %407 = arith.addf %405, %406 : vector<2x256xf32>
      %408 = vector.extract_strided_slice %407 {offsets = [0, 0], sizes = [2, 192], strides = [1, 1]} : vector<2x256xf32> to vector<2x192xf32>
      %cst_130 = arith.constant 5.000000e-01 : f32
      %409 = vector.broadcast %cst_130 : f32 to vector<2x192xf32>
      %410 = arith.mulf %409, %408 : vector<2x192xf32>
      %411 = math.tanh %410 : vector<2x192xf32>
      %cst_131 = arith.constant 1.000000e+00 : f32
      %412 = vector.broadcast %cst_131 : f32 to vector<2x192xf32>
      %413 = arith.addf %411, %412 : vector<2x192xf32>
      %cst_132 = arith.constant 5.000000e-01 : f32
      %414 = vector.broadcast %cst_132 : f32 to vector<2x192xf32>
      %415 = arith.mulf %414, %413 : vector<2x192xf32>
      %416 = vector.extract_strided_slice %415 {offsets = [0, 0], sizes = [2, 64], strides = [1, 1]} : vector<2x192xf32> to vector<2x64xf32>
      %417 = vector.extract_strided_slice %415 {offsets = [0, 64], sizes = [2, 64], strides = [1, 1]} : vector<2x192xf32> to vector<2x64xf32>
      %418 = vector.extract_strided_slice %415 {offsets = [0, 128], sizes = [2, 64], strides = [1, 1]} : vector<2x192xf32> to vector<2x64xf32>
      %419 = vector.extract_strided_slice %407 {offsets = [0, 192], sizes = [2, 64], strides = [1, 1]} : vector<2x256xf32> to vector<2x64xf32>
      %420 = math.tanh %419 : vector<2x64xf32>
      %421 = arith.mulf %417, %338 : vector<2x64xf32>
      %422 = arith.mulf %416, %420 : vector<2x64xf32>
      %423 = arith.addf %421, %422 : vector<2x64xf32>
      %424 = math.tanh %423 : vector<2x64xf32>
      %425 = arith.mulf %418, %424 : vector<2x64xf32>
      %c2_i32_133 = arith.constant 2 : i32
      %426 = arith.subi %350, %c2_i32_133 : i32
      %427 = arith.index_cast %426 : i32 to index
      %c0_134 = arith.constant 0 : index
      %c0_135 = arith.constant 0 : index
      %428 = vector.load %arg8[%427, %c0_134, %c0_135] : memref<70x1x64xf32, #tpu.memory_space<vmem>>, vector<1x1x64xf32>
      %429 = vector.shape_cast %428 : vector<1x1x64xf32> to vector<1x64xf32>
      %430 = vector.broadcast %429 : vector<1x64xf32> to vector<2x64xf32>
      %431 = arith.mulf %425, %430 : vector<2x64xf32>
      %432 = arith.addf %347, %431 : vector<2x64xf32>
      %c4_i32_136 = arith.constant 4 : i32
      %433 = arith.muli %arg11, %c4_i32_136 : i32
      %c2_i32_137 = arith.constant 2 : i32
      %434 = arith.addi %c2_i32_137, %433 : i32
      %c3_i32 = arith.constant 3 : i32
      %435 = arith.addi %434, %c3_i32 : i32
      %436 = arith.index_cast %435 : i32 to index
      %c0_138 = arith.constant 0 : index
      %c0_139 = arith.constant 0 : index
      %437 = vector.load %arg1[%436, %c0_138, %c0_139] : memref<70x2x50xf32, #tpu.memory_space<vmem>>, vector<1x2x50xf32>
      %438 = vector.shape_cast %437 : vector<1x2x50xf32> to vector<2x50xf32>
      %439 = tpu.concatenate %438, %377 in 1 : vector<2x50xf32>, vector<2x64xf32> -> vector<2x114xf32>
      %440 = arith.truncf %439 : vector<2x114xf32> to vector<2x114xbf16>
      %c0_140 = arith.constant 0 : index
      %c0_141 = arith.constant 0 : index
      %441 = vector.load %arg2[%c0_140, %c0_141] : memref<114x256xbf16, #tpu.memory_space<vmem>>, vector<114x256xbf16>
      %cst_142 = arith.constant dense<0.000000e+00> : vector<2x256xf32>
      %442 = tpu.matmul %440, %441, %cst_142 {dimension_numbers = #tpu.dot_dimension_numbers<[1], [0], [0], [1], [0, 0, 1, 1], [], []>} : vector<2x114xbf16>, vector<114x256xbf16>, vector<2x256xf32> -> vector<2x256xf32>
      %443 = vector.broadcast %0 : vector<1x256xf32> to vector<2x256xf32>
      %444 = arith.addf %442, %443 : vector<2x256xf32>
      %445 = vector.extract_strided_slice %444 {offsets = [0, 0], sizes = [2, 192], strides = [1, 1]} : vector<2x256xf32> to vector<2x192xf32>
      %cst_143 = arith.constant 5.000000e-01 : f32
      %446 = vector.broadcast %cst_143 : f32 to vector<2x192xf32>
      %447 = arith.mulf %446, %445 : vector<2x192xf32>
      %448 = math.tanh %447 : vector<2x192xf32>
      %cst_144 = arith.constant 1.000000e+00 : f32
      %449 = vector.broadcast %cst_144 : f32 to vector<2x192xf32>
      %450 = arith.addf %448, %449 : vector<2x192xf32>
      %cst_145 = arith.constant 5.000000e-01 : f32
      %451 = vector.broadcast %cst_145 : f32 to vector<2x192xf32>
      %452 = arith.mulf %451, %450 : vector<2x192xf32>
      %453 = vector.extract_strided_slice %452 {offsets = [0, 0], sizes = [2, 64], strides = [1, 1]} : vector<2x192xf32> to vector<2x64xf32>
      %454 = vector.extract_strided_slice %452 {offsets = [0, 64], sizes = [2, 64], strides = [1, 1]} : vector<2x192xf32> to vector<2x64xf32>
      %455 = vector.extract_strided_slice %452 {offsets = [0, 128], sizes = [2, 64], strides = [1, 1]} : vector<2x192xf32> to vector<2x64xf32>
      %456 = vector.extract_strided_slice %444 {offsets = [0, 192], sizes = [2, 64], strides = [1, 1]} : vector<2x256xf32> to vector<2x64xf32>
      %457 = math.tanh %456 : vector<2x64xf32>
      %458 = arith.mulf %454, %375 : vector<2x64xf32>
      %459 = arith.mulf %453, %457 : vector<2x64xf32>
      %460 = arith.addf %458, %459 : vector<2x64xf32>
      %461 = math.tanh %460 : vector<2x64xf32>
      %462 = arith.mulf %455, %461 : vector<2x64xf32>
      %463 = tpu.concatenate %377, %401 in 1 : vector<2x64xf32>, vector<2x64xf32> -> vector<2x128xf32>
      %464 = arith.truncf %463 : vector<2x128xf32> to vector<2x128xbf16>
      %c0_146 = arith.constant 0 : index
      %c0_147 = arith.constant 0 : index
      %465 = vector.load %arg4[%c0_146, %c0_147] : memref<128x256xbf16, #tpu.memory_space<vmem>>, vector<128x256xbf16>
      %cst_148 = arith.constant dense<0.000000e+00> : vector<2x256xf32>
      %466 = tpu.matmul %464, %465, %cst_148 {dimension_numbers = #tpu.dot_dimension_numbers<[1], [0], [0], [1], [0, 0, 1, 1], [], []>} : vector<2x128xbf16>, vector<128x256xbf16>, vector<2x256xf32> -> vector<2x256xf32>
      %467 = vector.broadcast %1 : vector<1x256xf32> to vector<2x256xf32>
      %468 = arith.addf %466, %467 : vector<2x256xf32>
      %469 = vector.extract_strided_slice %468 {offsets = [0, 0], sizes = [2, 192], strides = [1, 1]} : vector<2x256xf32> to vector<2x192xf32>
      %cst_149 = arith.constant 5.000000e-01 : f32
      %470 = vector.broadcast %cst_149 : f32 to vector<2x192xf32>
      %471 = arith.mulf %470, %469 : vector<2x192xf32>
      %472 = math.tanh %471 : vector<2x192xf32>
      %cst_150 = arith.constant 1.000000e+00 : f32
      %473 = vector.broadcast %cst_150 : f32 to vector<2x192xf32>
      %474 = arith.addf %472, %473 : vector<2x192xf32>
      %cst_151 = arith.constant 5.000000e-01 : f32
      %475 = vector.broadcast %cst_151 : f32 to vector<2x192xf32>
      %476 = arith.mulf %475, %474 : vector<2x192xf32>
      %477 = vector.extract_strided_slice %476 {offsets = [0, 0], sizes = [2, 64], strides = [1, 1]} : vector<2x192xf32> to vector<2x64xf32>
      %478 = vector.extract_strided_slice %476 {offsets = [0, 64], sizes = [2, 64], strides = [1, 1]} : vector<2x192xf32> to vector<2x64xf32>
      %479 = vector.extract_strided_slice %476 {offsets = [0, 128], sizes = [2, 64], strides = [1, 1]} : vector<2x192xf32> to vector<2x64xf32>
      %480 = vector.extract_strided_slice %468 {offsets = [0, 192], sizes = [2, 64], strides = [1, 1]} : vector<2x256xf32> to vector<2x64xf32>
      %481 = math.tanh %480 : vector<2x64xf32>
      %482 = arith.mulf %478, %399 : vector<2x64xf32>
      %483 = arith.mulf %477, %481 : vector<2x64xf32>
      %484 = arith.addf %482, %483 : vector<2x64xf32>
      %485 = math.tanh %484 : vector<2x64xf32>
      %486 = arith.mulf %479, %485 : vector<2x64xf32>
      %487 = tpu.concatenate %401, %425 in 1 : vector<2x64xf32>, vector<2x64xf32> -> vector<2x128xf32>
      %488 = arith.truncf %487 : vector<2x128xf32> to vector<2x128xbf16>
      %c0_152 = arith.constant 0 : index
      %c0_153 = arith.constant 0 : index
      %489 = vector.load %arg6[%c0_152, %c0_153] : memref<128x256xbf16, #tpu.memory_space<vmem>>, vector<128x256xbf16>
      %cst_154 = arith.constant dense<0.000000e+00> : vector<2x256xf32>
      %490 = tpu.matmul %488, %489, %cst_154 {dimension_numbers = #tpu.dot_dimension_numbers<[1], [0], [0], [1], [0, 0, 1, 1], [], []>} : vector<2x128xbf16>, vector<128x256xbf16>, vector<2x256xf32> -> vector<2x256xf32>
      %491 = vector.broadcast %2 : vector<1x256xf32> to vector<2x256xf32>
      %492 = arith.addf %490, %491 : vector<2x256xf32>
      %493 = vector.extract_strided_slice %492 {offsets = [0, 0], sizes = [2, 192], strides = [1, 1]} : vector<2x256xf32> to vector<2x192xf32>
      %cst_155 = arith.constant 5.000000e-01 : f32
      %494 = vector.broadcast %cst_155 : f32 to vector<2x192xf32>
      %495 = arith.mulf %494, %493 : vector<2x192xf32>
      %496 = math.tanh %495 : vector<2x192xf32>
      %cst_156 = arith.constant 1.000000e+00 : f32
      %497 = vector.broadcast %cst_156 : f32 to vector<2x192xf32>
      %498 = arith.addf %496, %497 : vector<2x192xf32>
      %cst_157 = arith.constant 5.000000e-01 : f32
      %499 = vector.broadcast %cst_157 : f32 to vector<2x192xf32>
      %500 = arith.mulf %499, %498 : vector<2x192xf32>
      %501 = vector.extract_strided_slice %500 {offsets = [0, 0], sizes = [2, 64], strides = [1, 1]} : vector<2x192xf32> to vector<2x64xf32>
      %502 = vector.extract_strided_slice %500 {offsets = [0, 64], sizes = [2, 64], strides = [1, 1]} : vector<2x192xf32> to vector<2x64xf32>
      %503 = vector.extract_strided_slice %500 {offsets = [0, 128], sizes = [2, 64], strides = [1, 1]} : vector<2x192xf32> to vector<2x64xf32>
      %504 = vector.extract_strided_slice %492 {offsets = [0, 192], sizes = [2, 64], strides = [1, 1]} : vector<2x256xf32> to vector<2x64xf32>
      %505 = math.tanh %504 : vector<2x64xf32>
      %506 = arith.mulf %502, %423 : vector<2x64xf32>
      %507 = arith.mulf %501, %505 : vector<2x64xf32>
      %508 = arith.addf %506, %507 : vector<2x64xf32>
      %509 = math.tanh %508 : vector<2x64xf32>
      %510 = arith.mulf %503, %509 : vector<2x64xf32>
      %c2_i32_158 = arith.constant 2 : i32
      %511 = arith.subi %435, %c2_i32_158 : i32
      %512 = arith.index_cast %511 : i32 to index
      %c0_159 = arith.constant 0 : index
      %c0_160 = arith.constant 0 : index
      %513 = vector.load %arg8[%512, %c0_159, %c0_160] : memref<70x1x64xf32, #tpu.memory_space<vmem>>, vector<1x1x64xf32>
      %514 = vector.shape_cast %513 : vector<1x1x64xf32> to vector<1x64xf32>
      %515 = vector.broadcast %514 : vector<1x64xf32> to vector<2x64xf32>
      %516 = arith.mulf %510, %515 : vector<2x64xf32>
      %517 = arith.addf %432, %516 : vector<2x64xf32>
      scf.yield %462, %460, %486, %484, %510, %508, %517 : vector<2x64xf32>, vector<2x64xf32>, vector<2x64xf32>, vector<2x64xf32>, vector<2x64xf32>, vector<2x64xf32>, vector<2x64xf32>
    }
    %c17_i32_29 = arith.constant 17 : i32
    %83 = tpu.concatenate %82#0, %82#2 in 1 : vector<2x64xf32>, vector<2x64xf32> -> vector<2x128xf32>
    %84 = arith.truncf %83 : vector<2x128xf32> to vector<2x128xbf16>
    %c0_30 = arith.constant 0 : index
    %c0_31 = arith.constant 0 : index
    %85 = vector.load %arg4[%c0_30, %c0_31] : memref<128x256xbf16, #tpu.memory_space<vmem>>, vector<128x256xbf16>
    %cst_32 = arith.constant dense<0.000000e+00> : vector<2x256xf32>
    %86 = tpu.matmul %84, %85, %cst_32 {dimension_numbers = #tpu.dot_dimension_numbers<[1], [0], [0], [1], [0, 0, 1, 1], [], []>} : vector<2x128xbf16>, vector<128x256xbf16>, vector<2x256xf32> -> vector<2x256xf32>
    %87 = vector.broadcast %1 : vector<1x256xf32> to vector<2x256xf32>
    %88 = arith.addf %86, %87 : vector<2x256xf32>
    %89 = vector.extract_strided_slice %88 {offsets = [0, 0], sizes = [2, 192], strides = [1, 1]} : vector<2x256xf32> to vector<2x192xf32>
    %cst_33 = arith.constant 5.000000e-01 : f32
    %90 = vector.broadcast %cst_33 : f32 to vector<2x192xf32>
    %91 = arith.mulf %90, %89 : vector<2x192xf32>
    %92 = math.tanh %91 : vector<2x192xf32>
    %cst_34 = arith.constant 1.000000e+00 : f32
    %93 = vector.broadcast %cst_34 : f32 to vector<2x192xf32>
    %94 = arith.addf %92, %93 : vector<2x192xf32>
    %cst_35 = arith.constant 5.000000e-01 : f32
    %95 = vector.broadcast %cst_35 : f32 to vector<2x192xf32>
    %96 = arith.mulf %95, %94 : vector<2x192xf32>
    %97 = vector.extract_strided_slice %96 {offsets = [0, 0], sizes = [2, 64], strides = [1, 1]} : vector<2x192xf32> to vector<2x64xf32>
    %98 = vector.extract_strided_slice %96 {offsets = [0, 64], sizes = [2, 64], strides = [1, 1]} : vector<2x192xf32> to vector<2x64xf32>
    %99 = vector.extract_strided_slice %96 {offsets = [0, 128], sizes = [2, 64], strides = [1, 1]} : vector<2x192xf32> to vector<2x64xf32>
    %100 = vector.extract_strided_slice %88 {offsets = [0, 192], sizes = [2, 64], strides = [1, 1]} : vector<2x256xf32> to vector<2x64xf32>
    %101 = math.tanh %100 : vector<2x64xf32>
    %102 = arith.mulf %98, %82#3 : vector<2x64xf32>
    %103 = arith.mulf %97, %101 : vector<2x64xf32>
    %104 = arith.addf %102, %103 : vector<2x64xf32>
    %105 = math.tanh %104 : vector<2x64xf32>
    %106 = arith.mulf %99, %105 : vector<2x64xf32>
    %107 = tpu.concatenate %82#2, %82#4 in 1 : vector<2x64xf32>, vector<2x64xf32> -> vector<2x128xf32>
    %108 = arith.truncf %107 : vector<2x128xf32> to vector<2x128xbf16>
    %c0_36 = arith.constant 0 : index
    %c0_37 = arith.constant 0 : index
    %109 = vector.load %arg6[%c0_36, %c0_37] : memref<128x256xbf16, #tpu.memory_space<vmem>>, vector<128x256xbf16>
    %cst_38 = arith.constant dense<0.000000e+00> : vector<2x256xf32>
    %110 = tpu.matmul %108, %109, %cst_38 {dimension_numbers = #tpu.dot_dimension_numbers<[1], [0], [0], [1], [0, 0, 1, 1], [], []>} : vector<2x128xbf16>, vector<128x256xbf16>, vector<2x256xf32> -> vector<2x256xf32>
    %111 = vector.broadcast %2 : vector<1x256xf32> to vector<2x256xf32>
    %112 = arith.addf %110, %111 : vector<2x256xf32>
    %113 = vector.extract_strided_slice %112 {offsets = [0, 0], sizes = [2, 192], strides = [1, 1]} : vector<2x256xf32> to vector<2x192xf32>
    %cst_39 = arith.constant 5.000000e-01 : f32
    %114 = vector.broadcast %cst_39 : f32 to vector<2x192xf32>
    %115 = arith.mulf %114, %113 : vector<2x192xf32>
    %116 = math.tanh %115 : vector<2x192xf32>
    %cst_40 = arith.constant 1.000000e+00 : f32
    %117 = vector.broadcast %cst_40 : f32 to vector<2x192xf32>
    %118 = arith.addf %116, %117 : vector<2x192xf32>
    %cst_41 = arith.constant 5.000000e-01 : f32
    %119 = vector.broadcast %cst_41 : f32 to vector<2x192xf32>
    %120 = arith.mulf %119, %118 : vector<2x192xf32>
    %121 = vector.extract_strided_slice %120 {offsets = [0, 0], sizes = [2, 64], strides = [1, 1]} : vector<2x192xf32> to vector<2x64xf32>
    %122 = vector.extract_strided_slice %120 {offsets = [0, 64], sizes = [2, 64], strides = [1, 1]} : vector<2x192xf32> to vector<2x64xf32>
    %123 = vector.extract_strided_slice %120 {offsets = [0, 128], sizes = [2, 64], strides = [1, 1]} : vector<2x192xf32> to vector<2x64xf32>
    %124 = vector.extract_strided_slice %112 {offsets = [0, 192], sizes = [2, 64], strides = [1, 1]} : vector<2x256xf32> to vector<2x64xf32>
    %125 = math.tanh %124 : vector<2x64xf32>
    %126 = arith.mulf %122, %82#5 : vector<2x64xf32>
    %127 = arith.mulf %121, %125 : vector<2x64xf32>
    %128 = arith.addf %126, %127 : vector<2x64xf32>
    %129 = math.tanh %128 : vector<2x64xf32>
    %130 = arith.mulf %123, %129 : vector<2x64xf32>
    %c68 = arith.constant 68 : index
    %c0_42 = arith.constant 0 : index
    %c0_43 = arith.constant 0 : index
    %131 = vector.load %arg8[%c68, %c0_42, %c0_43] : memref<70x1x64xf32, #tpu.memory_space<vmem>>, vector<1x1x64xf32>
    %132 = vector.shape_cast %131 : vector<1x1x64xf32> to vector<1x64xf32>
    %133 = vector.broadcast %132 : vector<1x64xf32> to vector<2x64xf32>
    %134 = arith.mulf %130, %133 : vector<2x64xf32>
    %135 = arith.addf %82#6, %134 : vector<2x64xf32>
    %136 = tpu.concatenate %106, %130 in 1 : vector<2x64xf32>, vector<2x64xf32> -> vector<2x128xf32>
    %137 = arith.truncf %136 : vector<2x128xf32> to vector<2x128xbf16>
    %c0_44 = arith.constant 0 : index
    %c0_45 = arith.constant 0 : index
    %138 = vector.load %arg6[%c0_44, %c0_45] : memref<128x256xbf16, #tpu.memory_space<vmem>>, vector<128x256xbf16>
    %cst_46 = arith.constant dense<0.000000e+00> : vector<2x256xf32>
    %139 = tpu.matmul %137, %138, %cst_46 {dimension_numbers = #tpu.dot_dimension_numbers<[1], [0], [0], [1], [0, 0, 1, 1], [], []>} : vector<2x128xbf16>, vector<128x256xbf16>, vector<2x256xf32> -> vector<2x256xf32>
    %140 = vector.broadcast %2 : vector<1x256xf32> to vector<2x256xf32>
    %141 = arith.addf %139, %140 : vector<2x256xf32>
    %142 = vector.extract_strided_slice %141 {offsets = [0, 0], sizes = [2, 192], strides = [1, 1]} : vector<2x256xf32> to vector<2x192xf32>
    %cst_47 = arith.constant 5.000000e-01 : f32
    %143 = vector.broadcast %cst_47 : f32 to vector<2x192xf32>
    %144 = arith.mulf %143, %142 : vector<2x192xf32>
    %145 = math.tanh %144 : vector<2x192xf32>
    %cst_48 = arith.constant 1.000000e+00 : f32
    %146 = vector.broadcast %cst_48 : f32 to vector<2x192xf32>
    %147 = arith.addf %145, %146 : vector<2x192xf32>
    %cst_49 = arith.constant 5.000000e-01 : f32
    %148 = vector.broadcast %cst_49 : f32 to vector<2x192xf32>
    %149 = arith.mulf %148, %147 : vector<2x192xf32>
    %150 = vector.extract_strided_slice %149 {offsets = [0, 0], sizes = [2, 64], strides = [1, 1]} : vector<2x192xf32> to vector<2x64xf32>
    %151 = vector.extract_strided_slice %149 {offsets = [0, 64], sizes = [2, 64], strides = [1, 1]} : vector<2x192xf32> to vector<2x64xf32>
    %152 = vector.extract_strided_slice %149 {offsets = [0, 128], sizes = [2, 64], strides = [1, 1]} : vector<2x192xf32> to vector<2x64xf32>
    %153 = vector.extract_strided_slice %141 {offsets = [0, 192], sizes = [2, 64], strides = [1, 1]} : vector<2x256xf32> to vector<2x64xf32>
    %154 = math.tanh %153 : vector<2x64xf32>
    %155 = arith.mulf %151, %128 : vector<2x64xf32>
    %156 = arith.mulf %150, %154 : vector<2x64xf32>
    %157 = arith.addf %155, %156 : vector<2x64xf32>
    %158 = math.tanh %157 : vector<2x64xf32>
    %159 = arith.mulf %152, %158 : vector<2x64xf32>
    %c69 = arith.constant 69 : index
    %c0_50 = arith.constant 0 : index
    %c0_51 = arith.constant 0 : index
    %160 = vector.load %arg8[%c69, %c0_50, %c0_51] : memref<70x1x64xf32, #tpu.memory_space<vmem>>, vector<1x1x64xf32>
    %161 = vector.shape_cast %160 : vector<1x1x64xf32> to vector<1x64xf32>
    %162 = vector.broadcast %161 : vector<1x64xf32> to vector<2x64xf32>
    %163 = arith.mulf %159, %162 : vector<2x64xf32>
    %164 = arith.addf %135, %163 : vector<2x64xf32>
    %cst_52 = arith.constant dense<0.000000e+00> : vector<2xf32>
    %165 = vector.multi_reduction <add>, %164, %cst_52 [1] : vector<2x64xf32> to vector<2xf32>
    %166 = vector.shape_cast %165 : vector<2xf32> to vector<2x1xf32>
    %c0_53 = arith.constant 0 : index
    %c0_54 = arith.constant 0 : index
    %167 = vector.load %arg9[%c0_53, %c0_54] : memref<1x1xf32, #tpu.memory_space<vmem>>, vector<1x1xf32>
    %168 = vector.broadcast %167 : vector<1x1xf32> to vector<2x1xf32>
    %169 = arith.addf %166, %168 : vector<2x1xf32>
    %cst_55 = arith.constant 5.000000e-01 : f32
    %170 = vector.broadcast %cst_55 : f32 to vector<2x1xf32>
    %171 = arith.mulf %170, %169 : vector<2x1xf32>
    %172 = math.tanh %171 : vector<2x1xf32>
    %cst_56 = arith.constant 1.000000e+00 : f32
    %173 = vector.broadcast %cst_56 : f32 to vector<2x1xf32>
    %174 = arith.addf %172, %173 : vector<2x1xf32>
    %cst_57 = arith.constant 5.000000e-01 : f32
    %175 = vector.broadcast %cst_57 : f32 to vector<2x1xf32>
    %176 = arith.mulf %175, %174 : vector<2x1xf32>
    %c0_58 = arith.constant 0 : index
    %c0_59 = arith.constant 0 : index
    %177 = vector.load %arg10[%c0_58, %c0_59] : memref<2x1xf32, #tpu.memory_space<vmem>>, vector<2x1xf32>
    tpu.vector_store %arg10[%c0_58, %c0_59], %176 {strides = array<i32>} : memref<2x1xf32, #tpu.memory_space<vmem>>, vector<2x1xf32>,
    return
  }
  func.func @transform_0(%arg0: i32) -> (i32, i32, i32) {
    %c0_i32 = arith.constant 0 : i32
    %c0_i32_0 = arith.constant 0 : i32
    %c0_i32_1 = arith.constant 0 : i32
    %c0_i32_2 = arith.constant 0 : i32
    return %c0_i32, %c0_i32_0, %c0_i32_1 : i32, i32, i32
  }
  func.func @transform_1(%arg0: i32) -> (i32, i32) {
    %c0_i32 = arith.constant 0 : i32
    %c0_i32_0 = arith.constant 0 : i32
    %c0_i32_1 = arith.constant 0 : i32
    return %c0_i32, %c0_i32_0 : i32, i32
  }
  func.func @transform_2(%arg0: i32) -> (i32, i32) {
    %c0_i32 = arith.constant 0 : i32
    %c0_i32_0 = arith.constant 0 : i32
    %c0_i32_1 = arith.constant 0 : i32
    return %c0_i32, %c0_i32_0 : i32, i32
  }
  func.func @transform_3(%arg0: i32) -> (i32, i32) {
    %c0_i32 = arith.constant 0 : i32
    %c0_i32_0 = arith.constant 0 : i32
    %c0_i32_1 = arith.constant 0 : i32
    return %c0_i32, %c0_i32_0 : i32, i32
  }
  func.func @transform_4(%arg0: i32) -> (i32, i32) {
    %c0_i32 = arith.constant 0 : i32
    %c0_i32_0 = arith.constant 0 : i32
    %c0_i32_1 = arith.constant 0 : i32
    return %c0_i32, %c0_i32_0 : i32, i32
  }
  func.func @transform_5(%arg0: i32) -> (i32, i32) {
    %c0_i32 = arith.constant 0 : i32
    %c0_i32_0 = arith.constant 0 : i32
    %c0_i32_1 = arith.constant 0 : i32
    return %c0_i32, %c0_i32_0 : i32, i32
  }
  func.func @transform_6(%arg0: i32) -> (i32, i32) {
    %c0_i32 = arith.constant 0 : i32
    %c0_i32_0 = arith.constant 0 : i32
    %c0_i32_1 = arith.constant 0 : i32
    return %c0_i32, %c0_i32_0 : i32, i32
  }
  func.func @transform_7(%arg0: i32) -> (i32, i32, i32) {
    %c0_i32 = arith.constant 0 : i32
    %c0_i32_0 = arith.constant 0 : i32
    %c0_i32_1 = arith.constant 0 : i32
    %c0_i32_2 = arith.constant 0 : i32
    return %c0_i32, %c0_i32_0, %c0_i32_1 : i32, i32, i32
  }
  func.func @transform_8(%arg0: i32) -> (i32, i32) {
    %c0_i32 = arith.constant 0 : i32
    %c0_i32_0 = arith.constant 0 : i32
    %c0_i32_1 = arith.constant 0 : i32
    return %c0_i32, %c0_i32_0 : i32, i32
  }
  func.func @transform_9(%arg0: i32) -> (i32, i32) {
    %c0_i32 = arith.constant 0 : i32
    %c0_i32_0 = arith.constant 0 : i32
    %c0_i32_1 = arith.constant 0 : i32
    return %c0_i32, %c0_i32_0 : i32, i32
  }
}

</mosaic_0001>

<bundles_post_ra>
// kernel: text_model_forward.1
= control target key start
LH: loop header
LB: loop body
LE: loop exit
PB: predicated region body
PF: predicated region fallthrough
CT: control target
= control target key end

     0   :  { %v3814_v2 = vmov 0   ;;  %vm39_vm0 = vcmask 408576   ;;  %vm147_vm1 = vcmask 1040384   ;;  %vm143_vm2 = vcmask 932864   ;;  %s2722_s22 = smov 64   ;;  %s2723_s10 = smov 50   ;;  %s3804_s1 = inlined_call_operand.vmem [shape: bf16[114,256], index: 1, kind: input, shape index: {}]   ;;  %s3805_s5 = inlined_call_operand.vmem [shape: bf16[128,256], index: 5, kind: input, shape index: {}]   ;;  %s3806_s6 = inlined_call_operand.vmem [shape: f32[1,256], index: 6, kind: input, shape index: {}]   ;;  %s3807_s7 = inlined_call_operand.vmem [shape: f32[70,1,64], index: 7, kind: input, shape index: {}]   ;;  %s3808_s8 = inlined_call_operand.<no memory space> [shape: f32[1,1], index: 8, kind: input, shape index: {}]   ;;  %s3809_s9 = inlined_call_operand.vmem [shape: f32[2,1], index: 9, kind: output, shape index: {}]   ;;  %s3810_s0 = inlined_call_operand.vmem [shape: f32[70,2,50], index: 0, kind: input, shape index: {}]   ;;  %s3811_s2 = inlined_call_operand.vmem [shape: f32[1,256], index: 2, kind: input, shape index: {}]   ;;  %s3812_s3 = inlined_call_operand.vmem [shape: bf16[128,256], index: 3, kind: input, shape index: {}]   ;;  %s3813_s4 = inlined_call_operand.vmem [shape: f32[1,256], index: 4, kind: input, shape index: {}]  }
   0x1   :  { %v14_v0 = vstv %s3808_s8  ;;  %v2783_v1 = vld [vmem:[%s3806_s6] sm:$0x3]  ;;  %186 = vmatprep.mubr.bf16.mxu0 %v3814_v2  ;;  %264 = vmatprep.mubr.bf16.mxu1 %v3814_v2  ;;  %v2369_v3 = vld [vmem:[%s3804_s1 + $0x4] ss:$8 sps:$4 sm:$0xff]   ;;  %v2372_v5 = vld [vmem:[%s3804_s1 + $0x14] ss:$8 sps:$4 sm:$0xff]   ;;  %v58_v24 = vlaneseq }
   0x2   :  { %3866 = vst [vmem:[#allocation3_spill] sm:$0xff] %v2783_v1  ;;  %15 = vst [vmem:[#allocation2] sm:$0x1] %v14_v0  ;;  %v2371_v4 = vld [vmem:[%s3804_s1] ss:$8 sps:$4 sm:$0xff]   ;;  %154 = vmatprep.subr.bf16.mxu0 %v2369_v3  ;;  %232 = vmatprep.subr.bf16.mxu1 %v2369_v3  ;;  %vm299_vm3 = vcmask 523264  }
   0x3   :  { %155 = vmatpush1.bf16.msra.mxu0 %v2371_v4  ;;  %v2374_v6 = vld [vmem:[%s3804_s1 + $0x10] ss:$8 sps:$4 sm:$0xff]   ;;  %233 = vmatpush1.bf16.msra.mxu1 %v2371_v4  ;;  %v2375_v7 = vld [vmem:[%s3804_s1 + $0x24] ss:$8 sps:$4 sm:$0xff]   ;;  %v2377_v8 = vld [vmem:[%s3804_s1 + $0x20] ss:$8 sps:$4 sm:$0xff]  }
   0x4   :  { %156 = vmatprep.subr.bf16.mxu0 %v2372_v5  ;;  %234 = vmatprep.subr.bf16.mxu1 %v2372_v5  ;;  %v2378_v9 = vld [vmem:[%s3804_s1 + $0x34] ss:$8 sps:$4 sm:$0xff]   ;;  %v2380_v10 = vld [vmem:[%s3804_s1 + $0x30] ss:$8 sps:$4 sm:$0xff]   ;;  %v2381_v11 = vld [vmem:[%s3804_s1 + $0x44] ss:$8 sps:$4 sm:$0xff]  }
   0x5   :  { %v2383_v12 = vld [vmem:[%s3804_s1 + $0x40] ss:$8 sps:$4 sm:$0xff]   ;;  %v2384_v13 = vld [vmem:[%s3804_s1 + $0x54] ss:$8 sps:$4 sm:$0xff]   ;;  %v2386_v14 = vld [vmem:[%s3804_s1 + $0x50] ss:$8 sps:$4 sm:$0xff]  }
   0x6   :  { %v2387_v15 = vld [vmem:[%s3804_s1 + $0x64] ss:$8 sps:$4 sm:$0xff]   ;;  %v56_v16 = vld [vmem:[%s3804_s1 + $0x70] sm:$0x11]  ;;  %v2389_v17 = vld [vmem:[%s3804_s1 + $0x60] ss:$8 sps:$4 sm:$0xff]  }
   0x7   :  { %157 = vmatpush1.bf16.msra.mxu0 %v2374_v6  ;;  %235 = vmatpush1.bf16.msra.mxu1 %v2374_v6  ;;  %v2170_v18 = vcombine.high %v56_v16, %v56_v16  ;;  %v2169_v19 = vcombine.low %v56_v16, %v56_v16  ;;  %v38_v20 = vld [vmem:[%s3810_s0] sm:$0x3]  ;;  %v59_v25 = vshrl.u32 %v58_v24, 7  ;;  %v2866_v45 = vld [vmem:[%s3812_s3 + $0x4] ss:$8 sps:$4 sm:$0xff]   ;;  %vm2192_vm4 = vmpackc.low %vm299_vm3, %vm299_vm3 }
   0x8   :  { %158 = vmatprep.subr.bf16.mxu0 %v2375_v7  ;;  %236 = vmatprep.subr.bf16.mxu1 %v2375_v7  ;;  %v40_v21 = vsel %vm39_vm0, %v38_v20, 0.0  ;;  %v35_v27 = vld [vmem:[%s3811_s2] sm:$0x3]  ;;  %3871 = vst [vmem:[#allocation8_spill] sm:$0xff] %v2866_v45  ;;  %v2871_v46 = vld [vmem:[%s3812_s3 + $0x14] ss:$8 sps:$4 sm:$0xff]  }
   0x9   :  { %v149_v22 = vsel %vm147_vm1, %v2169_v19, 0  ;;  %v41_v23 = vpack.c.bf16 %v40_v21, %v40_v21  ;;  %v2841_v26 = vsub.s32 1, %v59_v25  ;;  %v2851_v35 = vsub.s32 0, %v59_v25  ;;  %v2861_v44 = vld [vmem:[%s3812_s3] ss:$8 sps:$4 sm:$0xff]   ;;  %3872 = vst [vmem:[#allocation9_spill] sm:$0xff] %v2871_v46 }
   0xa   :  { %3870 = vst [vmem:[#allocation7_spill] sm:$0xff] %v2861_v44  ;;  %v2878_v47 = vld [vmem:[%s3812_s3 + $0x10] ss:$8 sps:$4 sm:$0xff]   ;;  %v2884_v48 = vld [vmem:[%s3812_s3 + $0x24] ss:$8 sps:$4 sm:$0xff]  }
   0xb   :  { %159 = vmatpush1.bf16.msra.mxu0 %v2377_v8  ;;  %237 = vmatpush1.bf16.msra.mxu1 %v2377_v8  ;;  %3867 = vst [vmem:[#allocation4_spill] sm:$0xff] %v2841_v26  ;;  %v2847_v28 = vrot.slane %v35_v27, %v2841_v26  ;;  %3869 = vst [vmem:[#allocation6_spill] sm:$0xff] %v2851_v35  ;;  %v2854_v36 = vrot.slane %v35_v27, %v2851_v35  ;;  %v2890_v49 = vld [vmem:[%s3812_s3 + $0x20] ss:$8 sps:$4 sm:$0xff]   ;;  %v2896_v50 = vld [vmem:[%s3812_s3 + $0x34] ss:$8 sps:$4 sm:$0xff]  }
   0xc   :  { %160 = vmatprep.subr.bf16.mxu0 %v2378_v9  ;;  %238 = vmatprep.subr.bf16.mxu1 %v2378_v9  ;;  %3873 = vst [vmem:[#allocation10_spill] sm:$0xff] %v2878_v47  ;;  %3874 = vst [vmem:[#allocation11_spill] sm:$0xff] %v2884_v48  ;;  %v2902_v51 = vld [vmem:[%s3812_s3 + $0x30] ss:$8 sps:$4 sm:$0xff]   ;;  %v2908_v52 = vld [vmem:[%s3812_s3 + $0x44] ss:$8 sps:$4 sm:$0xff]  }
   0xd   :  { %3868 = vst [vmem:[#allocation5_spill] sm:$0xff] %v2847_v28  ;;  %3875 = vst [vmem:[#allocation12_spill] sm:$0xff] %v2890_v49  ;;  %v2914_v53 = vld [vmem:[%s3812_s3 + $0x40] ss:$8 sps:$4 sm:$0xff]   ;;  %v2920_v54 = vld [vmem:[%s3812_s3 + $0x54] ss:$8 sps:$4 sm:$0xff]  }
   0xe   :  { %3876 = vst [vmem:[#allocation13_spill] sm:$0xff] %v2896_v50  ;;  %3877 = vst [vmem:[#allocation14_spill] sm:$0xff] %v2902_v51  ;;  %v2926_v55 = vld [vmem:[%s3812_s3 + $0x50] ss:$8 sps:$4 sm:$0xff]   ;;  %v2932_v56 = vld [vmem:[%s3812_s3 + $0x64] ss:$8 sps:$4 sm:$0xff]  }
   0xf   :  { %161 = vmatpush1.bf16.msra.mxu0 %v2380_v10  ;;  %239 = vmatpush1.bf16.msra.mxu1 %v2380_v10  ;;  %3878 = vst [vmem:[#allocation15_spill] sm:$0xff] %v2908_v52  ;;  %3879 = vst [vmem:[#allocation16_spill] sm:$0xff] %v2914_v53  ;;  %v2938_v57 = vld [vmem:[%s3812_s3 + $0x60] ss:$8 sps:$4 sm:$0xff]   ;;  %v2945_v59 = vld [vmem:[%s3812_s3 + $0x74] ss:$8 sps:$4 sm:$0xff]  }
  0x10   :  { %162 = vmatprep.subr.bf16.mxu0 %v2381_v11  ;;  %240 = vmatprep.subr.bf16.mxu1 %v2381_v11  ;;  %3880 = vst [vmem:[#allocation17_spill] sm:$0xff] %v2920_v54  ;;  %3881 = vst [vmem:[#allocation18_spill] sm:$0xff] %v2926_v55  ;;  %v2950_v61 = vld [vmem:[%s3812_s3 + $0x70] ss:$8 sps:$4 sm:$0xff]   ;;  %v2173_v9 = vld [vmem:[%s3810_s0 + $0x2] sm:$0x3] }
  0x11   :  { %3882 = vst [vmem:[#allocation19_spill] sm:$0xff] %v2932_v56  ;;  %3883 = vst [vmem:[#allocation20_spill] sm:$0xff] %v2938_v57 }
  0x12   :  { %3884 = vst [vmem:[#allocation21_spill] sm:$0xff] %v2945_v59  ;;  %3885 = vst [vmem:[#allocation22_spill] sm:$0xff] %v2950_v61 }
  0x13   :  { %163 = vmatpush1.bf16.msra.mxu0 %v2383_v12  ;;  %241 = vmatpush1.bf16.msra.mxu1 %v2383_v12 }
  0x14   :  { %164 = vmatprep.subr.bf16.mxu0 %v2384_v13  ;;  %242 = vmatprep.subr.bf16.mxu1 %v2384_v13  ;;  %v36_v13 = vld [vmem:[%s3813_s4] sm:$0x3]  ;;  %s2999_s4 = smov 0  }
  0x15   :  { %v2974_v21 = vrot.slane %v36_v13, %v2851_v35 }
  0x17   :  { %165 = vmatpush1.bf16.msra.mxu0 %v2386_v14  ;;  %243 = vmatpush1.bf16.msra.mxu1 %v2386_v14  ;;  %v2969_v14 = vrot.slane %v36_v13, %v2841_v26 }
  0x18   :  { %166 = vmatprep.subr.bf16.mxu0 %v2387_v15  ;;  %244 = vmatprep.subr.bf16.mxu1 %v2387_v15 }
  0x19   :  { %3886 = vst [vmem:[#allocation23_spill] sm:$0xff] %v2969_v14 }
  0x1b   :  { %167 = vmatpush1.bf16.msra.mxu0 %v2389_v17  ;;  %245 = vmatpush1.bf16.msra.mxu1 %v2389_v17 }
  0x1c   :  { %2171 = vmatprep.subr.msk.bf16.mxu0 %vm147_vm1, %v2170_v18  ;;  %2174 = vmatprep.subr.msk.bf16.mxu1 %vm147_vm1, %v2170_v18 }
  0x1f   :  { %169 = vmatpush1.bf16.msra.mxu0 %v149_v22  ;;  %247 = vmatpush1.bf16.msra.mxu1 %v149_v22 }
  0x20   :  { %409 = vmatprep.subr.bf16.mxu0 %v2866_v45 }
  0x22   :  { %2172 = vmatmul.mubr.msk.bf16.vlgmr.msra.gmra.mrb[0].mxu0 %vm143_vm2, %v41_v23 }
  0x23   :  { %441 = vmatprep.mubr.bf16.mxu0 %v3814_v2  ;;  %410 = vmatpush1.bf16.msra.mxu0 %v2861_v44 }
  0x24   :  { %411 = vmatprep.subr.bf16.mxu0 %v2871_v46 }
  0x27   :  { %412 = vmatpush1.bf16.msra.mxu0 %v2878_v47 }
  0x28   :  { %413 = vmatprep.subr.bf16.mxu0 %v2884_v48 }
  0x2b   :  { %414 = vmatpush1.bf16.msra.mxu0 %v2890_v49 }
  0x2c   :  { %415 = vmatprep.subr.bf16.mxu0 %v2896_v50 }
  0x2f   :  { %416 = vmatpush1.bf16.msra.mxu0 %v2902_v51 }
  0x30   :  { %417 = vmatprep.subr.bf16.mxu0 %v2908_v52 }
  0x33   :  { %418 = vmatpush1.bf16.msra.mxu0 %v2914_v53 }
  0x34   :  { %419 = vmatprep.subr.bf16.mxu0 %v2920_v54 }
  0x37   :  { %420 = vmatpush1.bf16.msra.mxu0 %v2926_v55 }
  0x38   :  { %421 = vmatprep.subr.bf16.mxu0 %v2932_v56 }
  0x3b   :  { %422 = vmatpush1.bf16.msra.mxu0 %v2938_v57 }
  0x3c   :  { %423 = vmatprep.subr.bf16.mxu0 %v2945_v59 }
  0x3f   :  { %424 = vmatpush1.bf16.msra.mxu0 %v2950_v61 }
  0xf5   :  { %v188_v29 = vpop.f32.mrb[0].mxu0 }
  0xf6   :  { %v190_v30 = vpop.f32.mrb[1].mxu0  ;;  %v189_v37 = vadd.f32 %v188_v29, %v2854_v36 }
  0xf7   :  { %v191_v31 = vadd.f32 %v190_v30, %v2847_v28  ;;  %v192_v32 = vpop.f32.mrb[2].mxu0 }
  0xf8   :  { %v193_v33 = vpop.f32.mrb[3].mxu0  ;;  %v195_v38 = vmul.f32 0.5, %v189_v37 }
  0xf9   :  { %2416 = vtanh.f32 %v191_v31  ;;  %v196_v0 = vmul.f32 0.5, %v191_v31 }
  0xfa   :  { %2418 = vtanh.f32 %v195_v38 }
 0x103   :  { %v2417_v34 = vpop.eup %2416 }
 0x104   :  { %206 = vrot.lane.b32.xlu0 %v2417_v34, %s2722_s22  ;;  %v2419_v39 = vpop.eup %2418 }
 0x105   :  { %v199_v40 = vadd.f32 1.0, %v2419_v39 }
 0x107   :  { %v201_v41 = vmul.f32 0.5, %v199_v40 }
 0x109   :  { %v204_v58 = vmul.f32 0.0, %v201_v41 }
 0x176   :  { %v207_v42 = vpop.permute.xlu0 %206 }
 0x177   :  { %v209_v43 = vmul.f32 %v207_v42, %v201_v41 }
 0x179   :  { %211 = vrot.lane.b32.xlu0 %v209_v43, %s2722_s22 }
 0x1eb   :  { %v212_v60 = vpop.permute.xlu0 %211 }
 0x1ec   :  { %v2952_v62 = vadd.f32 %v212_v60, %v204_v58 }
 0x1ee   :  { %2420 = vtanh.f32 %v2952_v62 }
 0x1ef   :  { %2422 = vtanh.f32 %v196_v0 }
 0x1f8   :  { %v2421_v63 = vpop.eup %2420 }
 0x1f9   :  { %217 = vrot.lane.b32.xlu1 %v2421_v63, %s2722_s22  ;;  %v2423_v3 = vpop.eup %2422 }
 0x1fa   :  { %v200_v4 = vadd.f32 1.0, %v2423_v3 }
 0x1fc   :  { %v202_v5 = vmul.f32 0.5, %v200_v4 }
 0x26b   :  { %v218_v6 = vpop.permute.xlu1 %217 }
 0x26c   :  { %v220_v7 = vmul.f32 %v218_v6, %v202_v5 }
 0x26e   :  { %v2193_v8 = vpack.c.bf16 %v220_v7, %v220_v7  ;;  %224 = vrot.lane.b32.xlu1 %v220_v7, %s2723_s10 }
 0x270   :  { %2194 = vmatmul.mubr.msk.bf16.vlgmr.msra.gmra.mrb[4].mxu0 %vm2192_vm4, %v2193_v8 }
 0x2e0   :  { %v225_v10 = vpop.permute.xlu1 %224 }
 0x2e1   :  { %v227_v11 = vsel %vm39_vm0, %v2173_v9, %v225_v10 }
 0x2e2   :  { %v228_v12 = vpack.c.bf16 %v227_v11, %v227_v11 }
 0x2e4   :  { %2175 = vmatmul.mubr.msk.bf16.vlgmr.msra.gmra.mrb[0].mxu1 %vm143_vm2, %v228_v12 }
 0x343   :  { %v443_v15 = vpop.f32.mrb[4].mxu0 }
 0x344   :  { %v445_v16 = vpop.f32.mrb[5].mxu0  ;;  %v444_v22 = vadd.f32 %v443_v15, %v2974_v21 }
 0x345   :  { %v446_v17 = vadd.f32 %v445_v16, %v2969_v14  ;;  %v447_v18 = vpop.f32.mrb[6].mxu0 }
 0x346   :  { %v448_v19 = vpop.f32.mrb[7].mxu0  ;;  %v450_v23 = vmul.f32 0.5, %v444_v22 }
 0x347   :  { %2424 = vtanh.f32 %v446_v17  ;;  %v451_v5 = vmul.f32 0.5, %v446_v17 }
 0x348   :  { %2426 = vtanh.f32 %v450_v23  ;;  %v2985_v23 = vmov 0.0  }
 0x351   :  { %v2425_v20 = vpop.eup %2424 }
 0x352   :  { %461 = vrot.lane.b32.xlu1 %v2425_v20, %s2722_s22  ;;  %v2427_v31 = vpop.eup %2426 }
 0x353   :  { %v454_v32 = vadd.f32 1.0, %v2427_v31 }
 0x355   :  { %v456_v33 = vmul.f32 0.5, %v454_v32 }
 0x357   :  { %v459_v60 = vmul.f32 0.0, %v456_v33 }
 0x3b7   :  { %v266_v24 = vpop.f32.mrb[0].mxu1 }
 0x3b8   :  { %v268_v25 = vpop.f32.mrb[1].mxu1  ;;  %v267_v39 = vadd.f32 %v266_v24, %v2854_v36  ;;  %v2989_v24 = vmov 0.0  }
 0x3b9   :  { %v269_v27 = vadd.f32 %v268_v25, %v2847_v28  ;;  %v270_v29 = vpop.f32.mrb[2].mxu1 }
 0x3ba   :  { %v271_v30 = vpop.f32.mrb[3].mxu1  ;;  %v273_v40 = vmul.f32 0.5, %v267_v39 }
 0x3bb   :  { %2428 = vtanh.f32 %v269_v27  ;;  %v274_v16 = vmul.f32 0.5, %v269_v27 }
 0x3bc   :  { %2430 = vtanh.f32 %v273_v40 }
 0x3c4   :  { %v462_v34 = vpop.permute.xlu1 %461 }
 0x3c5   :  { %v2429_v37 = vpop.eup %2428  ;;  %v464_v38 = vmul.f32 %v462_v34, %v456_v33 }
 0x3c6   :  { %284 = vrot.lane.b32.xlu0 %v2429_v37, %s2722_s22  ;;  %v2431_v41 = vpop.eup %2430 }
 0x3c7   :  { %466 = vrot.lane.b32.xlu1 %v464_v38, %s2722_s22  ;;  %v277_v42 = vadd.f32 1.0, %v2431_v41 }
 0x3c9   :  { %v279_v43 = vmul.f32 0.5, %v277_v42 }
 0x3cb   :  { %v282_v6 = vmul.f32 %v279_v43, %v2952_v62  ;;  %v2987_v62 = vmov 0.0  }
 0x438   :  { %v285_v58 = vpop.permute.xlu0 %284 }
 0x439   :  { %v287_v63 = vmul.f32 %v285_v58, %v279_v43  ;;  %v467_v0 = vpop.permute.xlu1 %466 }
 0x43a   :  { %v469_v3 = vadd.f32 %v467_v0, %v459_v60  }
 0x43b   :  { %289 = vrot.lane.b32.xlu0 %v287_v63, %s2722_s22 }
 0x43c   :  { %2432 = vtanh.f32 %v469_v3 }
 0x43d   :  { %2434 = vtanh.f32 %v451_v5 }
 0x446   :  { %v2433_v4 = vpop.eup %2432 }
 0x447   :  { %472 = vrot.lane.b32.xlu1 %v2433_v4, %s2722_s22  ;;  %v2435_v9 = vpop.eup %2434 }
 0x448   :  { %v455_v10 = vadd.f32 1.0, %v2435_v9 }
 0x44a   :  { %v457_v11 = vmul.f32 0.5, %v455_v10 }
 0x4ad   :  { %v290_v7 = vpop.permute.xlu0 %289 }
 0x4ae   :  { %v292_v8 = vadd.f32 %v290_v7, %v282_v6  }
 0x4b0   :  { %2436 = vtanh.f32 %v292_v8 }
 0x4b1   :  { %2438 = vtanh.f32 %v274_v16 }
 0x4b9   :  { %v473_v12 = vpop.permute.xlu1 %472 }
 0x4ba   :  { %v2437_v13 = vpop.eup %2436  ;;  %v475_v15 = vmul.f32 %v473_v12, %v457_v11  }
 0x4bb   :  { %295 = vrot.lane.b32.xlu0 %v2437_v13, %s2722_s22  ;;  %v2439_v18 = vpop.eup %2438 }
 0x4bc   :  { %v278_v19 = vadd.f32 1.0, %v2439_v18 }
 0x4be   :  { %v280_v20 = vmul.f32 0.5, %v278_v19 }
 0x52d   :  { %v296_v17 = vpop.permute.xlu0 %295 }
 0x52e   :  { %v298_v22 = vmul.f32 %v296_v17, %v280_v20  }
 0x52f LB: > { %v3887_v1 = vld [vmem:[#allocation3_spill] sm:$0xff]  ;;  %3888 = vst [vmem:[#allocation24_spill] sm:$0xff] %v2691_v23  ;;  %s2724_s6 = smov 50   ;;  %s2725_s18 = smov 64   ;;  %v3040_v29 = vld [vmem:[%s3804_s1 + $0x14] ss:$8 sps:$4 sm:$0xff]   ;;  %v2691_v23 = vphi %v2985_v23, %v3941_v23   ;;  %s2719_s4 = sphi %s2999_s4, %s481_s4   ;;  %v2715_v22 = vphi %v298_v22, %v3946_v22   ;;  %v2711_v8 = vphi %v292_v8, %v1571_v8   ;;  %v2707_v15 = vphi %v475_v15, %v3945_v15   ;;  %v2703_v3 = vphi %v469_v3, %v3944_v3   ;;  %v2699_v24 = vphi %v2989_v24, %v3943_v24   ;;  %v2695_v62 = vphi %v2987_v62, %v3942_v62  }
 0x530   : > { %v3026_v25 = vld [vmem:[%s3804_s1 + $0x4] ss:$8 sps:$4 sm:$0xff]   ;;  %v3031_v27 = vld [vmem:[%s3804_s1] ss:$8 sps:$4 sm:$0xff]   ;;  %495 = vrot.lane.b32.xlu0 %v2715_v22, %s2724_s6  ;;  %667 = vrot.lane.b32.xlu1 %v2707_v15, %s2725_s18  ;;  %v3816_v32 = vmov 0   ;;  %s2295_s16 = sshll.u32 %s2719_s4, 3 }
 0x531   : > { %3889 = vst [vmem:[#allocation25_spill] sm:$0xff] %v3026_v25  ;;  %v3045_v30 = vld [vmem:[%s3804_s1 + $0x10] ss:$8 sps:$4 sm:$0xff]   ;;  %599 = vmatprep.subr.bf16.mxu0 %v3026_v25  ;;  %v3051_v31 = vld [vmem:[%s3812_s3 + $0x4] ss:$8 sps:$4 sm:$0xff]   ;;  %631 = vmatprep.mubr.bf16.mxu0 %v3816_v32  ;;  %s3232_s19 = scalar_lea.vmem %s3810_s0, %s2295_s16  ;;  %s2195_s30 = sshll.u32 %s2719_s4, 2 }
 0x532   : > { %600 = vmatpush1.bf16.msra.mxu0 %v3031_v27  ;;  %v3058_v33 = vld [vmem:[%s3812_s3] ss:$8 sps:$4 sm:$0xff]   ;;  %800 = vmatprep.mubr.bf16.mxu1 %v3816_v32  ;;  %v3066_v34 = vld [vmem:[%s3804_s1 + $0x24] ss:$8 sps:$4 sm:$0xff]   ;;  %v3073_v37 = vld [vmem:[%s3812_s3 + $0x14] ss:$8 sps:$4 sm:$0xff]   ;;  %s3515_s12 = scalar_lea.vmem %s3807_s7, %s2195_s30 }
 0x533   : > { %601 = vmatprep.subr.bf16.mxu0 %v3040_v29  ;;  %768 = vmatprep.subr.bf16.mxu1 %v3051_v31  ;;  %v3078_v38 = vld [vmem:[%s3812_s3 + $0x10] ss:$8 sps:$4 sm:$0xff]   ;;  %v3084_v39 = vld [vmem:[%s3804_s1 + $0x20] ss:$8 sps:$4 sm:$0xff]   ;;  %v3091_v40 = vld [vmem:[%s3804_s1 + $0x34] ss:$8 sps:$4 sm:$0xff]  }
 0x534   : > { %836 = vrot.lane.b32.xlu0 %v2699_v24, %s2725_s18  ;;  %769 = vmatpush1.bf16.msra.mxu1 %v3058_v33  ;;  %v3096_v41 = vld [vmem:[%s3812_s3 + $0x24] ss:$8 sps:$4 sm:$0xff]   ;;  %v3102_v42 = vld [vmem:[%s3812_s3 + $0x20] ss:$8 sps:$4 sm:$0xff]   ;;  %v3108_v43 = vld [vmem:[%s3812_s3 + $0x34] ss:$8 sps:$4 sm:$0xff]  }
 0x535   : > { %770 = vmatprep.subr.bf16.mxu1 %v3073_v37  ;;  %3890 = vst [vmem:[#allocation26_spill] sm:$0xff] %v3102_v42  ;;  %3891 = vst [vmem:[#allocation27_spill] sm:$0xff] %v3108_v43  ;;  %v3114_v58 = vld [vmem:[%s3804_s1 + $0x30] ss:$8 sps:$4 sm:$0xff]   ;;  %v3120_v60 = vld [vmem:[%s3804_s1 + $0x44] ss:$8 sps:$4 sm:$0xff]  }
 0x536   : > { %602 = vmatpush1.bf16.msra.mxu0 %v3045_v30  ;;  %v3126_v63 = vld [vmem:[%s3812_s3 + $0x30] ss:$8 sps:$4 sm:$0xff]   ;;  %v3132_v0 = vld [vmem:[%s3812_s3 + $0x44] ss:$8 sps:$4 sm:$0xff]   ;;  %v3138_v4 = vld [vmem:[%s3804_s1 + $0x40] ss:$8 sps:$4 sm:$0xff]  }
 0x537   : > { %603 = vmatprep.subr.bf16.mxu0 %v3066_v34  ;;  %3892 = vst [vmem:[#allocation28_spill] sm:$0xff] %v3126_v63  ;;  %3893 = vst [vmem:[#allocation29_spill] sm:$0xff] %v3132_v0  ;;  %v3144_v5 = vld [vmem:[%s3804_s1 + $0x54] ss:$8 sps:$4 sm:$0xff]   ;;  %v3150_v6 = vld [vmem:[%s3812_s3 + $0x40] ss:$8 sps:$4 sm:$0xff]  }
 0x538   : > { %771 = vmatpush1.bf16.msra.mxu1 %v3078_v38  ;;  %3894 = vst [vmem:[#allocation30_spill] sm:$0xff] %v3150_v6  ;;  %v3156_v7 = vld [vmem:[%s3812_s3 + $0x54] ss:$8 sps:$4 sm:$0xff]   ;;  %v3162_v9 = vld [vmem:[%s3804_s1 + $0x50] ss:$8 sps:$4 sm:$0xff]   ;;  %v3903_v14 = vld [vmem:[#allocation23_spill] sm:$0xff] }
 0x539   : > { %772 = vmatprep.subr.bf16.mxu1 %v3096_v41  ;;  %3895 = vst [vmem:[#allocation31_spill] sm:$0xff] %v3156_v7  ;;  %v3168_v10 = vld [vmem:[%s3804_s1 + $0x64] ss:$8 sps:$4 sm:$0xff]   ;;  %v3173_v11 = vld [vmem:[%s3812_s3 + $0x50] ss:$8 sps:$4 sm:$0xff]   ;;  %s481_s4 = sadd.s32 1, %s2719_s4  }
 0x53a   : > { %604 = vmatpush1.bf16.msra.mxu0 %v3084_v39  ;;  %3896 = vst [vmem:[#allocation32_spill] sm:$0xff] %v3173_v11  ;;  %v514_v12 = vld [vmem:[%s3804_s1 + $0x70] sm:$0x11]  ;;  %v3183_v13 = vld [vmem:[%s3812_s3 + $0x64] ss:$8 sps:$4 sm:$0xff]   ;;  %v3906_v35 = vld [vmem:[#allocation6_spill] sm:$0xff] }
 0x53b   : > { %605 = vmatprep.subr.bf16.mxu0 %v3091_v40  ;;  %3897 = vst [vmem:[#allocation33_spill] sm:$0xff] %v3183_v13  ;;  %v3189_v16 = vld [vmem:[%s3804_s1 + $0x60] ss:$8 sps:$4 sm:$0xff]   ;;  %v3192_v18 = vcombine.high %v514_v12, %v514_v12  ;;  %v2213_v19 = vcombine.low %v514_v12, %v514_v12  ;;  %v3204_v17 = vld [vmem:[%s3812_s3 + $0x74] ss:$8 sps:$4 sm:$0xff]   ;;  %p478_p0 = scmp.ge.s32.totalorder %s481_s4, 17  }
 0x53c   : > { %773 = vmatpush1.bf16.msra.mxu1 %v3102_v42  ;;  %v3198_v20 = vld [vmem:[%s3812_s3 + $0x60] ss:$8 sps:$4 sm:$0xff]   ;;  %3899 = vst [vmem:[#allocation35_spill] sm:$0xff] %v3204_v17  ;;  %v3215_v12 = vld [vmem:[%s3805_s5 + $0x4] ss:$8 sps:$4 sm:$0xff]   ;;  %v3902_v28 = vld [vmem:[#allocation5_spill] sm:$0xff] }
 0x53d   : > { %774 = vmatprep.subr.bf16.mxu1 %v3108_v43  ;;  %3898 = vst [vmem:[#allocation34_spill] sm:$0xff] %v3198_v20  ;;  %v3210_v24 = vsel %vm147_vm1, %v2213_v19, 0  ;;  %v3221_v2 = vld [vmem:[%s3812_s3 + $0x70] ss:$8 sps:$4 sm:$0xff]   ;;  %v2198_v19 = vld [vmem:[%s3232_s19 + $0x4] sm:$0x3] }
 0x53e   : > { %606 = vmatpush1.bf16.msra.mxu0 %v3114_v58  ;;  %3900 = vst [vmem:[#allocation36_spill] sm:$0xff] %v3221_v2  ;;  %v3239_v57 = vld [vmem:[%s3805_s5] ss:$8 sps:$4 sm:$0xff]   ;;  %v3246_v53 = vld [vmem:[%s3805_s5 + $0x14] ss:$8 sps:$4 sm:$0xff]   ;;  %vm2080_vm5 = vcmask (%p478_p0), 517120  }
 0x53f   : > { %607 = vmatprep.subr.bf16.mxu0 %v3120_v60  ;;  %v3303_v52 = vld [vmem:[%s3805_s5 + $0x54] ss:$8 sps:$4 sm:$0xff]   ;;  %v3311_v51 = vld [vmem:[%s3805_s5 + $0x50] ss:$8 sps:$4 sm:$0xff]   ;;  %v3317_v50 = vld [vmem:[%s3805_s5 + $0x64] ss:$8 sps:$4 sm:$0xff]  }
 0x540   : > { %775 = vmatpush1.bf16.msra.mxu1 %v3126_v63  ;;  %v3325_v49 = vld [vmem:[%s3805_s5 + $0x60] ss:$8 sps:$4 sm:$0xff]   ;;  %v3331_v48 = vld [vmem:[%s3805_s5 + $0x74] ss:$8 sps:$4 sm:$0xff]   ;;  %v3341_v44 = vld [vmem:[%s3805_s5 + $0x70] ss:$8 sps:$4 sm:$0xff]  }
 0x541   : > { %776 = vmatprep.subr.bf16.mxu1 %v3132_v0  ;;  %v3904_v26 = vld [vmem:[#allocation4_spill] sm:$0xff]  ;;  %vm2096_vm6 = vcmask (%p478_p0), 1024  }
 0x542   : > { %608 = vmatpush1.bf16.msra.mxu0 %v3138_v4 }
 0x543   : > { %609 = vmatprep.subr.bf16.mxu0 %v3144_v5 }
 0x544   : > { %777 = vmatpush1.bf16.msra.mxu1 %v3150_v6 }
 0x545   : > { %778 = vmatprep.subr.bf16.mxu1 %v3156_v7 }
 0x546   : > { %610 = vmatpush1.bf16.msra.mxu0 %v3162_v9 }
 0x547   : > { %611 = vmatprep.subr.bf16.mxu0 %v3168_v10 }
 0x548   : > { %779 = vmatpush1.bf16.msra.mxu1 %v3173_v11 }
 0x549   : > { %780 = vmatprep.subr.bf16.mxu1 %v3183_v13 }
 0x54a   : > { %612 = vmatpush1.bf16.msra.mxu0 %v3189_v16 }
 0x54b   : > { %2215 = vmatprep.subr.msk.bf16.mxu0 %vm147_vm1, %v3192_v18 }
 0x54c   : > { %781 = vmatpush1.bf16.msra.mxu1 %v3198_v20 }
 0x54d   : > { %782 = vmatprep.subr.bf16.mxu1 %v3204_v17 }
 0x54e   : > { %614 = vmatpush1.bf16.msra.mxu0 %v3210_v24 }
 0x54f   : > { %948 = vmatprep.subr.bf16.mxu0 %v3215_v12 }
 0x550   : > { %783 = vmatpush1.bf16.msra.mxu1 %v3221_v2 }
 0x551   : > { %1038 = vmatprep.subr.bf16.mxu1 %v3026_v25 }
 0x5a2   : > { %v496_v32 = vpop.permute.xlu0 %495  ;;  %v668_v61 = vpop.permute.xlu1 %667 }
 0x5a3   : > { %v498_v59 = vsel %vm39_vm0, %v2198_v19, %v496_v32  ;;  %v670_v56 = vsel %vm299_vm3, %v2715_v22, %v668_v61  ;;  %v3253_v32 = vld [vmem:[%s3805_s5 + $0x10] ss:$8 sps:$4 sm:$0xff]   ;;  %v3901_v19 = vmov 0   ;;  %v3289_v61 = vld [vmem:[%s3805_s5 + $0x44] ss:$8 sps:$4 sm:$0xff]  }
 0x5a4   : > { %v499_v55 = vpack.c.bf16 %v498_v59, %v498_v59  ;;  %v671_v54 = vpack.c.bf16 %v670_v56, %v670_v56  ;;  %v3260_v56 = vld [vmem:[%s3805_s5 + $0x24] ss:$8 sps:$4 sm:$0xff]   ;;  %v3283_v59 = vld [vmem:[%s3805_s5 + $0x30] ss:$8 sps:$4 sm:$0xff]   ;;  %v3297_v22 = vld [vmem:[%s3805_s5 + $0x40] ss:$8 sps:$4 sm:$0xff]  }
 0x5a6   : > { %2216 = vmatmul.mubr.msk.bf16.vlgmr.msra.gmra.mrb[0].mxu0 %vm143_vm2, %v499_v55  ;;  %801 = vmatmul.mubr.bf16.vlgmr.msra.gmra.mrb[0].mxu1 %v671_v54  ;;  %v3269_v54 = vld [vmem:[%s3805_s5 + $0x20] ss:$8 sps:$4 sm:$0xff]   ;;  %v3275_v55 = vld [vmem:[%s3805_s5 + $0x34] ss:$8 sps:$4 sm:$0xff]   ;;  %v837_v47 = vpop.permute.xlu0 %836 }
 0x5a7   : > { %949 = vmatpush1.bf16.msra.mxu0 %v3239_v57  ;;  %980 = vmatprep.mubr.bf16.mxu0 %v3901_v19  ;;  %v839_v46 = vsel %vm299_vm3, %v2707_v15, %v837_v47 }
 0x5a8   : > { %950 = vmatprep.subr.bf16.mxu0 %v3246_v53  ;;  %1039 = vmatpush1.bf16.msra.mxu1 %v3031_v27  ;;  %v840_v45 = vpack.c.bf16 %v839_v46, %v839_v46 }
 0x5a9   : > { %1040 = vmatprep.subr.bf16.mxu1 %v3040_v29  ;;  %1070 = vmatprep.mubr.bf16.mxu1 %v3901_v19 }
 0x5ab   : > { %951 = vmatpush1.bf16.msra.mxu0 %v3253_v32 }
 0x5ac   : > { %952 = vmatprep.subr.bf16.mxu0 %v3260_v56  ;;  %1041 = vmatpush1.bf16.msra.mxu1 %v3045_v30 }
 0x5ad   : > { %1042 = vmatprep.subr.bf16.mxu1 %v3066_v34 }
 0x5af   : > { %953 = vmatpush1.bf16.msra.mxu0 %v3269_v54 }
 0x5b0   : > { %954 = vmatprep.subr.bf16.mxu0 %v3275_v55  ;;  %1043 = vmatpush1.bf16.msra.mxu1 %v3084_v39 }
 0x5b1   : > { %1044 = vmatprep.subr.bf16.mxu1 %v3091_v40 }
 0x5b3   : > { %955 = vmatpush1.bf16.msra.mxu0 %v3283_v59 }
 0x5b4   : > { %956 = vmatprep.subr.bf16.mxu0 %v3289_v61  ;;  %1045 = vmatpush1.bf16.msra.mxu1 %v3114_v58 }
 0x5b5   : > { %1046 = vmatprep.subr.bf16.mxu1 %v3120_v60 }
 0x5b7   : > { %957 = vmatpush1.bf16.msra.mxu0 %v3297_v22 }
 0x5b8   : > { %958 = vmatprep.subr.bf16.mxu0 %v3303_v52  ;;  %1047 = vmatpush1.bf16.msra.mxu1 %v3138_v4 }
 0x5b9   : > { %1048 = vmatprep.subr.bf16.mxu1 %v3144_v5 }
 0x5bb   : > { %959 = vmatpush1.bf16.msra.mxu0 %v3311_v51 }
 0x5bc   : > { %960 = vmatprep.subr.bf16.mxu0 %v3317_v50  ;;  %1049 = vmatpush1.bf16.msra.mxu1 %v3162_v9 }
 0x5bd   : > { %1050 = vmatprep.subr.bf16.mxu1 %v3168_v10 }
 0x5bf   : > { %961 = vmatpush1.bf16.msra.mxu0 %v3325_v49 }
 0x5c0   : > { %962 = vmatprep.subr.bf16.mxu0 %v3331_v48  ;;  %1051 = vmatpush1.bf16.msra.mxu1 %v3189_v16 }
 0x5c1   : > { %2253 = vmatprep.subr.msk.bf16.mxu1 %vm147_vm1, %v3192_v18 }
 0x5c3   : > { %963 = vmatpush1.bf16.msra.mxu0 %v3341_v44 }
 0x5c4   : > { %1111 = vmatprep.subr.bf16.mxu0 %v3051_v31  ;;  %1053 = vmatpush1.bf16.msra.mxu1 %v3210_v24 }
 0x5c5   : > { %1184 = vmatprep.subr.bf16.mxu1 %v3215_v12 }
 0x5c6   : > { %981 = vmatmul.mubr.bf16.vlgmr.msra.gmra.mrb[4].mxu0 %v840_v45 }
 0x5c7   : > { %1112 = vmatpush1.bf16.msra.mxu0 %v3058_v33  ;;  %1143 = vmatprep.mubr.bf16.mxu0 %v3901_v19 }
 0x5c8   : > { %1113 = vmatprep.subr.bf16.mxu0 %v3073_v37 }
 0x5cb   : > { %1114 = vmatpush1.bf16.msra.mxu0 %v3078_v38 }
 0x5cc   : > { %1115 = vmatprep.subr.bf16.mxu0 %v3096_v41 }
 0x5cf   : > { %1116 = vmatpush1.bf16.msra.mxu0 %v3102_v42 }
 0x5d0   : > { %1117 = vmatprep.subr.bf16.mxu0 %v3108_v43  ;;  %v3388_v43 = vrot.slane %v3887_v1, %v3906_v35 }
 0x5d3   : > { %1118 = vmatpush1.bf16.msra.mxu0 %v3126_v63 }
 0x5d4   : > { %1119 = vmatprep.subr.bf16.mxu0 %v3132_v0 }
 0x5d7   : > { %1120 = vmatpush1.bf16.msra.mxu0 %v3150_v6 }
 0x5d8   : > { %1121 = vmatprep.subr.bf16.mxu0 %v3156_v7 }
 0x5db   : > { %1122 = vmatpush1.bf16.msra.mxu0 %v3173_v11 }
 0x5dc   : > { %1123 = vmatprep.subr.bf16.mxu0 %v3183_v13 }
 0x5df   : > { %1124 = vmatpush1.bf16.msra.mxu0 %v3198_v20 }
 0x5e0   : > { %1125 = vmatprep.subr.bf16.mxu0 %v3204_v17 }
 0x5e3   : > { %1126 = vmatpush1.bf16.msra.mxu0 %v3221_v2  ;;  %v3377_v2 = vrot.slane %v3887_v1, %v3904_v26 }
 0x5e4   : > { %1275 = vmatprep.subr.bf16.mxu0 %v3026_v25 }
 0x5e5   : > { %3905 = vst [vmem:[#allocation37_spill] sm:$0xff] %v3377_v2 }
 0x679   : > { %v633_v45 = vpop.f32.mrb[0].mxu0  ;;  %v802_v46 = vpop.f32.mrb[0].mxu1 }
 0x67a   : > { %v635_v47 = vpop.f32.mrb[1].mxu0  ;;  %v804_v15 = vpop.f32.mrb[1].mxu1 }
 0x67b   : > { %v3369_v23 = vadd.f32 %v635_v47, %v3902_v28  ;;  %v637_v7 = vpop.f32.mrb[2].mxu0  ;;  %v806_v6 = vpop.f32.mrb[2].mxu1  ;;  %v805_v20 = vadd.f32 %v804_v15, %v3903_v14 }
 0x67c   : > { %v638_v11 = vpop.f32.mrb[3].mxu0  ;;  %v807_v0 = vpop.f32.mrb[3].mxu1 }
 0x67d   : > { %2511 = vtanh.f32 %v3369_v23 }
 0x67e   : > { %2513 = vtanh.f32 %v805_v20 }
 0x687   : > { %v2512_v17 = vpop.eup %2511 }
 0x688   : > { %651 = vrot.lane.b32.xlu1 %v2512_v17, %s2725_s18  ;;  %v2514_v25 = vpop.eup %2513  ;;  %v634_v17 = vadd.f32 %v633_v45, %v2854_v36 }
 0x68a   : > { %v640_v14 = vmul.f32 0.5, %v634_v17 }
 0x68c   : > { %820 = vrot.lane.b32.xlu1 %v2514_v25, %s2725_s18  ;;  %v803_v25 = vadd.f32 %v802_v46, %v2974_v21 }
 0x68e   : > { %v809_v26 = vmul.f32 0.5, %v803_v25 }
 0x699   : > { %v982_v47 = vpop.f32.mrb[4].mxu0 }
 0x69a   : > { %v984_v7 = vpop.f32.mrb[5].mxu0  ;;  %v983_v46 = vadd.f32 %v982_v47, %v3388_v43 }
 0x69b   : > { %v3380_v6 = vadd.f32 %v984_v7, %v3377_v2  ;;  %v986_v0 = vpop.f32.mrb[6].mxu0 }
 0x69c   : > { %v987_v11 = vpop.f32.mrb[7].mxu0 }
 0x69d   : > { %2515 = vtanh.f32 %v3380_v6 }
 0x69e   : > { %2517 = vtanh.f32 %v640_v14 }
 0x69f   : > { %2519 = vtanh.f32 %v809_v26  ;;  %v989_v26 = vmul.f32 0.5, %v983_v46 }
 0x6a1   : > { %2521 = vtanh.f32 %v989_v26 }
 0x6a7   : > { %v2516_v15 = vpop.eup %2515 }
 0x6a8   : > { %1000 = vrot.lane.b32.xlu0 %v2516_v15, %s2725_s18  ;;  %v2518_v28 = vpop.eup %2517 }
 0x6a9   : > { %v644_v13 = vadd.f32 1.0, %v2518_v28  ;;  %v2520_v63 = vpop.eup %2519 }
 0x6aa   : > { %v813_v0 = vadd.f32 1.0, %v2520_v63 }
 0x6ab   : > { %v646_v7 = vmul.f32 0.5, %v644_v13  ;;  %v2522_v28 = vpop.eup %2521 }
 0x6ac   : > { %v815_v45 = vmul.f32 0.5, %v813_v0  ;;  %v993_v13 = vadd.f32 1.0, %v2522_v28 }
 0x6ad   : > { %v649_v25 = vmul.f32 %v2711_v8, %v646_v7 }
 0x6ae   : > { %v995_v17 = vmul.f32 0.5, %v993_v13  ;;  %v818_v47 = vmul.f32 %v2703_v3, %v815_v45  ;;  %v641_v3 = vmul.f32 0.5, %v3369_v23  ;;  %v990_v23 = vmul.f32 0.5, %v3380_v6 }
 0x6b0   : > { %v998_v8 = vmul.f32 %v2695_v62, %v995_v17 }
 0x6fa   : > { %v652_v2 = vpop.permute.xlu1 %651 }
 0x6fb   : > { %v654_v11 = vmul.f32 %v652_v2, %v646_v7 }
 0x6fd   : > { %656 = vrot.lane.b32.xlu0 %v654_v11, %s2725_s18 }
 0x6fe   : > { %v821_v15 = vpop.permute.xlu1 %820 }
 0x6ff   : > { %v823_v14 = vmul.f32 %v821_v15, %v815_v45  ;;  %v810_v45 = vmul.f32 0.5, %v805_v20 }
 0x701   : > { %825 = vrot.lane.b32.xlu0 %v823_v14, %s2725_s18 }
 0x71a   : > { %v1001_v63 = vpop.permute.xlu0 %1000 }
 0x71b   : > { %v1003_v2 = vmul.f32 %v1001_v63, %v995_v17 }
 0x71d   : > { %1005 = vrot.lane.b32.xlu1 %v1003_v2, %s2725_s18 }
 0x76f   : > { %v657_v1 = vpop.permute.xlu0 %656 }
 0x770   : > { %v3395_v11 = vadd.f32 %v657_v1, %v649_v25 }
 0x772   : > { %2523 = vtanh.f32 %v3395_v11 }
 0x773   : > { %v826_v0 = vpop.permute.xlu0 %825 }
 0x774   : > { %v3399_v15 = vadd.f32 %v826_v0, %v818_v47 }
 0x776   : > { %2525 = vtanh.f32 %v3399_v15 }
 0x77c   : > { %v2524_v46 = vpop.eup %2523 }
 0x77d   : > { %662 = vrot.lane.b32.xlu1 %v2524_v46, %s2725_s18 }
 0x780   : > { %v2526_v14 = vpop.eup %2525 }
 0x781   : > { %831 = vrot.lane.b32.xlu1 %v2526_v14, %s2725_s18 }
 0x78f   : > { %v1006_v7 = vpop.permute.xlu1 %1005 }
 0x790   : > { %v3405_v1 = vadd.f32 %v1006_v7, %v998_v8 }
 0x792   : > { %2527 = vtanh.f32 %v3405_v1 }
 0x793   : > { %2529 = vtanh.f32 %v641_v3  ;;  %v2252_v3 = vld [vmem:[%s3232_s19 + $0x6] sm:$0x3] }
 0x794   : > { %2531 = vtanh.f32 %v810_v45 }
 0x795   : > { %2533 = vtanh.f32 %v990_v23  ;;  %v3910_v23 = vld [vmem:[#allocation30_spill] sm:$0xff] }
 0x79c   : > { %v2528_v26 = vpop.eup %2527 }
 0x79d   : > { %1011 = vrot.lane.b32.xlu0 %v2528_v26, %s2725_s18  ;;  %v2530_v28 = vpop.eup %2529 }
 0x79e   : > { %v645_v13 = vadd.f32 1.0, %v2530_v28  ;;  %v2532_v63 = vpop.eup %2531 }
 0x79f   : > { %v814_v62 = vadd.f32 1.0, %v2532_v63  ;;  %v2534_v20 = vpop.eup %2533 }
 0x7a0   : > { %v647_v2 = vmul.f32 0.5, %v645_v13  ;;  %v994_v14 = vadd.f32 1.0, %v2534_v20  ;;  %v3911_v20 = vld [vmem:[#allocation31_spill] sm:$0xff] }
 0x7a1   : > { %v816_v47 = vmul.f32 0.5, %v814_v62 }
 0x7a2   : > { %v996_v8 = vmul.f32 0.5, %v994_v14  ;;  %v3912_v14 = vld [vmem:[#allocation32_spill] sm:$0xff] }
 0x7ef   : > { %v663_v25 = vpop.permute.xlu1 %662 }
 0x7f0   : > { %v665_v17 = vmul.f32 %v663_v25, %v647_v2 }
 0x7f2   : > { %1030 = vrot.lane.b32.xlu0 %v665_v17, %s2724_s6 }
 0x7f3   : > { %v832_v0 = vpop.permute.xlu1 %831 }
 0x7f4   : > { %v834_v46 = vmul.f32 %v832_v0, %v816_v47  ;;  %v3907_v47 = vld [vmem:[#allocation27_spill] sm:$0xff]  ;;  %v3908_v0 = vld [vmem:[#allocation28_spill] sm:$0xff] }
 0x7f6   : > { %1106 = vrot.lane.b32.xlu0 %v834_v46, %s2725_s18 }
 0x80f   : > { %v1012_v7 = vpop.permute.xlu0 %1011 }
 0x810   : > { %v3413_v26 = vmul.f32 %v1012_v7, %v996_v8  ;;  %v3913_v8 = vld [vmem:[#allocation33_spill] sm:$0xff]  ;;  %v3914_v7 = vld [vmem:[#allocation34_spill] sm:$0xff] }
 0x812   : > { %1179 = vrot.lane.b32.xlu1 %v3413_v26, %s2725_s18 }
 0x864   : > { %v1031_v45 = vpop.permute.xlu0 %1030 }
 0x865   : > { %v1033_v28 = vsel %vm39_vm0, %v2252_v3, %v1031_v45  ;;  %v3915_v3 = vld [vmem:[#allocation35_spill] sm:$0xff]  ;;  %v3916_v45 = vld [vmem:[#allocation36_spill] sm:$0xff] }
 0x866   : > { %v1034_v13 = vpack.c.bf16 %v1033_v28, %v1033_v28  ;;  %v3917_v28 = vld [vmem:[#allocation25_spill] sm:$0xff] }
 0x868   : > { %2254 = vmatmul.mubr.msk.bf16.vlgmr.msra.gmra.mrb[4].mxu1 %vm143_vm2, %v1034_v13  ;;  %v1107_v6 = vpop.permute.xlu0 %1106 }
 0x869   : > { %1185 = vmatpush1.bf16.msra.mxu1 %v3239_v57  ;;  %1216 = vmatprep.mubr.bf16.mxu1 %v3901_v19  ;;  %v1109_v63 = vsel %vm299_vm3, %v665_v17, %v1107_v6 }
 0x86a   : > { %1186 = vmatprep.subr.bf16.mxu1 %v3246_v53  ;;  %v1110_v2 = vpack.c.bf16 %v1109_v63, %v1109_v63  ;;  %v3918_v63 = vld [vmem:[#allocation5_spill] sm:$0xff] }
 0x86c   : > { %1144 = vmatmul.mubr.bf16.vlgmr.msra.gmra.mrb[8].mxu0 %v1110_v2 }
 0x86d   : > { %1187 = vmatpush1.bf16.msra.mxu1 %v3253_v32  ;;  %1276 = vmatpush1.bf16.msra.mxu0 %v3031_v27 }
 0x86e   : > { %1188 = vmatprep.subr.bf16.mxu1 %v3260_v56  ;;  %1277 = vmatprep.subr.bf16.mxu0 %v3040_v29 }
 0x86f   : > { %1307 = vmatprep.mubr.bf16.mxu0 %v3901_v19 }
 0x871   : > { %1189 = vmatpush1.bf16.msra.mxu1 %v3269_v54  ;;  %1278 = vmatpush1.bf16.msra.mxu0 %v3045_v30 }
 0x872   : > { %1190 = vmatprep.subr.bf16.mxu1 %v3275_v55  ;;  %1279 = vmatprep.subr.bf16.mxu0 %v3066_v34 }
 0x875   : > { %1191 = vmatpush1.bf16.msra.mxu1 %v3283_v59  ;;  %1280 = vmatpush1.bf16.msra.mxu0 %v3084_v39 }
 0x876   : > { %1192 = vmatprep.subr.bf16.mxu1 %v3289_v61  ;;  %1281 = vmatprep.subr.bf16.mxu0 %v3091_v40 }
 0x879   : > { %1193 = vmatpush1.bf16.msra.mxu1 %v3297_v22  ;;  %1282 = vmatpush1.bf16.msra.mxu0 %v3114_v58 }
 0x87a   : > { %1194 = vmatprep.subr.bf16.mxu1 %v3303_v52  ;;  %1283 = vmatprep.subr.bf16.mxu0 %v3120_v60 }
 0x87d   : > { %1195 = vmatpush1.bf16.msra.mxu1 %v3311_v51  ;;  %1284 = vmatpush1.bf16.msra.mxu0 %v3138_v4 }
 0x87e   : > { %1196 = vmatprep.subr.bf16.mxu1 %v3317_v50  ;;  %1285 = vmatprep.subr.bf16.mxu0 %v3144_v5 }
 0x881   : > { %1197 = vmatpush1.bf16.msra.mxu1 %v3325_v49  ;;  %1286 = vmatpush1.bf16.msra.mxu0 %v3162_v9 }
 0x882   : > { %1198 = vmatprep.subr.bf16.mxu1 %v3331_v48  ;;  %1287 = vmatprep.subr.bf16.mxu0 %v3168_v10 }
 0x884   : > { %v1180_v25 = vpop.permute.xlu1 %1179 }
 0x885   : > { %v1182_v62 = vsel %vm299_vm3, %v834_v46, %v1180_v25  ;;  %1199 = vmatpush1.bf16.msra.mxu1 %v3341_v44  ;;  %1288 = vmatpush1.bf16.msra.mxu0 %v3189_v16  ;;  %v3909_v46 = vld [vmem:[#allocation29_spill] sm:$0xff] }
 0x886   : > { %v1183_v17 = vpack.c.bf16 %v1182_v62, %v1182_v62  ;;  %1348 = vmatprep.subr.bf16.mxu1 %v3051_v31  ;;  %2261 = vmatprep.subr.msk.bf16.mxu0 %vm147_vm1, %v3192_v18 }
 0x888   : > { %1217 = vmatmul.mubr.bf16.vlgmr.msra.gmra.mrb[8].mxu1 %v1183_v17 }
 0x889   : > { %1349 = vmatpush1.bf16.msra.mxu1 %v3058_v33  ;;  %1380 = vmatprep.mubr.bf16.mxu1 %v3901_v19 }
 0x88a   : > { %1350 = vmatprep.subr.bf16.mxu1 %v3073_v37  ;;  %1290 = vmatpush1.bf16.msra.mxu0 %v3210_v24 }
 0x88b   : > { %1421 = vmatprep.subr.bf16.mxu0 %v3215_v12 }
 0x88d   : > { %1351 = vmatpush1.bf16.msra.mxu1 %v3078_v38 }
 0x88e   : > { %1352 = vmatprep.subr.bf16.mxu1 %v3096_v41 }
 0x891   : > { %1353 = vmatpush1.bf16.msra.mxu1 %v3102_v42 }
 0x892   : > { %1354 = vmatprep.subr.bf16.mxu1 %v3907_v47 }
 0x895   : > { %1355 = vmatpush1.bf16.msra.mxu1 %v3908_v0 }
 0x896   : > { %1356 = vmatprep.subr.bf16.mxu1 %v3909_v46 }
 0x899   : > { %1357 = vmatpush1.bf16.msra.mxu1 %v3910_v23 }
 0x89a   : > { %1358 = vmatprep.subr.bf16.mxu1 %v3911_v20 }
 0x89d   : > { %1359 = vmatpush1.bf16.msra.mxu1 %v3912_v14 }
 0x89e   : > { %1360 = vmatprep.subr.bf16.mxu1 %v3913_v8  ;;  %v3919_v8 = vld [vmem:[#allocation23_spill] sm:$0xff] }
 0x8a1   : > { %1361 = vmatpush1.bf16.msra.mxu1 %v3914_v7 }
 0x8a2   : > { %1362 = vmatprep.subr.bf16.mxu1 %v3915_v3 }
 0x8a5   : > { %1363 = vmatpush1.bf16.msra.mxu1 %v3916_v45 }
 0x8a6   : > { %1511 = vmatprep.subr.bf16.mxu1 %v3917_v28 }
 0x93b   : > { %v1072_v13 = vpop.f32.mrb[4].mxu1 }
 0x93c   : > { %v1074_v6 = vpop.f32.mrb[5].mxu1 }
 0x93d   : > { %v3475_v2 = vadd.f32 %v1074_v6, %v3918_v63  ;;  %v1076_v25 = vpop.f32.mrb[6].mxu1  ;;  %v3920_v63 = vld [vmem:[#allocation37_spill] sm:$0xff] }
 0x93e   : > { %v1077_v62 = vpop.f32.mrb[7].mxu1 }
 0x93f   : > { %2535 = vtanh.f32 %v3475_v2  ;;  %v1145_v17 = vpop.f32.mrb[8].mxu0 }
 0x940   : > { %v1147_v35 = vpop.f32.mrb[9].mxu0 }
 0x941   : > { %v1148_v14 = vadd.f32 %v1147_v35, %v3919_v8  ;;  %v1149_v7 = vpop.f32.mrb[10].mxu0  ;;  %v1073_v35 = vadd.f32 %v1072_v13, %v2854_v36 }
 0x942   : > { %v1150_v20 = vpop.f32.mrb[11].mxu0  ;;  %v1146_v7 = vadd.f32 %v1145_v17, %v2974_v21 }
 0x943   : > { %2537 = vtanh.f32 %v1148_v14  ;;  %v1079_v20 = vmul.f32 0.5, %v1073_v35 }
 0x949   : > { %v2536_v3 = vpop.eup %2535 }
 0x94a   : > { %1090 = vrot.lane.b32.xlu1 %v2536_v3, %s2725_s18  ;;  %v1152_v3 = vmul.f32 0.5, %v1146_v7 }
 0x94d   : > { %v2538_v28 = vpop.eup %2537 }
 0x94e   : > { %1163 = vrot.lane.b32.xlu1 %v2538_v28, %s2725_s18 }
 0x95b   : > { %v1218_v45 = vpop.f32.mrb[8].mxu1 }
 0x95c   : > { %v1220_v6 = vpop.f32.mrb[9].mxu1 }
 0x95d   : > { %v3482_v25 = vadd.f32 %v1220_v6, %v3920_v63  ;;  %v1222_v62 = vpop.f32.mrb[10].mxu1 }
 0x95e   : > { %v1223_v23 = vpop.f32.mrb[11].mxu1 }
 0x95f   : > { %2539 = vtanh.f32 %v3482_v25 }
 0x960   : > { %2541 = vtanh.f32 %v1079_v20 }
 0x961   : > { %2543 = vtanh.f32 %v1152_v3 }
 0x969   : > { %v2540_v46 = vpop.eup %2539 }
 0x96a   : > { %1236 = vrot.lane.b32.xlu0 %v2540_v46, %s2725_s18  ;;  %v2542_v28 = vpop.eup %2541  ;;  %v1219_v46 = vadd.f32 %v1218_v45, %v3388_v43 }
 0x96b   : > { %v1083_v8 = vadd.f32 1.0, %v2542_v28  ;;  %v2544_v0 = vpop.eup %2543 }
 0x96c   : > { %v1156_v62 = vadd.f32 1.0, %v2544_v0  ;;  %v1225_v17 = vmul.f32 0.5, %v1219_v46 }
 0x96d   : > { %v1085_v6 = vmul.f32 0.5, %v1083_v8 }
 0x96e   : > { %v1158_v47 = vmul.f32 0.5, %v1156_v62  ;;  %2545 = vtanh.f32 %v1225_v17 }
 0x96f   : > { %v1088_v0 = vmul.f32 %v1085_v6, %v3395_v11 }
 0x978   : > { %v2546_v35 = vpop.eup %2545 }
 0x979   : > { %v1229_v20 = vadd.f32 1.0, %v2546_v35 }
 0x97b   : > { %v1231_v7 = vmul.f32 0.5, %v1229_v20 }
 0x97d   : > { %v1234_v11 = vmul.f32 %v1231_v7, %v3405_v1 }
 0x9bc   : > { %v1091_v63 = vpop.permute.xlu1 %1090 }
 0x9bd   : > { %v1093_v23 = vmul.f32 %v1091_v63, %v1085_v6 }
 0x9bf   : > { %1095 = vrot.lane.b32.xlu0 %v1093_v23, %s2725_s18 }
 0x9c0   : > { %v1164_v42 = vpop.permute.xlu1 %1163 }
 0x9c1   : > { %v1166_v13 = vmul.f32 %v1164_v42, %v1158_v47  ;;  %v1161_v42 = vmul.f32 %v1158_v47, %v3399_v15  ;;  %v1080_v15 = vmul.f32 0.5, %v3475_v2  ;;  %v1153_v47 = vmul.f32 0.5, %v1148_v14 }
 0x9c2   : > { %v1226_v2 = vmul.f32 0.5, %v3482_v25  ;;  %v3921_v25 = vld [vmem:[#allocation24_spill] sm:$0xff] }
 0x9c3   : > { %1168 = vrot.lane.b32.xlu0 %v1166_v13, %s2725_s18 }
 0x9dc   : > { %v1237_v3 = vpop.permute.xlu0 %1236 }
 0x9dd   : > { %v1239_v28 = vmul.f32 %v1237_v3, %v1231_v7 }
 0x9df   : > { %1241 = vrot.lane.b32.xlu1 %v1239_v28, %s2725_s18 }
 0xa31   : > { %v1096_v8 = vpop.permute.xlu0 %1095 }
 0xa32   : > { %v3493_v63 = vadd.f32 %v1096_v8, %v1088_v0 }
 0xa34   : > { %2547 = vtanh.f32 %v3493_v63 }
 0xa35   : > { %v1169_v45 = vpop.permute.xlu0 %1168 }
 0xa36   : > { %v3497_v62 = vadd.f32 %v1169_v45, %v1161_v42 }
 0xa38   : > { %2549 = vtanh.f32 %v3497_v62 }
 0xa3e   : > { %v2548_v23 = vpop.eup %2547 }
 0xa3f   : > { %1101 = vrot.lane.b32.xlu1 %v2548_v23, %s2725_s18 }
 0xa42   : > { %v2550_v46 = vpop.eup %2549 }
 0xa43   : > { %1174 = vrot.lane.b32.xlu1 %v2550_v46, %s2725_s18  ;;  %v2249_v46 = vld [vmem:[%s3515_s12] ss:$0 sm:$0xff] }
 0xa51   : > { %v1242_v6 = vpop.permute.xlu1 %1241 }
 0xa52   : > { %v3503_v13 = vadd.f32 %v1242_v6, %v1234_v11  ;;  %v1023_v11 = vmul.f32 %v2249_v46, %v3413_v26 }
 0xa54   : > { %2551 = vtanh.f32 %v3503_v13 }
 0xa55   : > { %2553 = vtanh.f32 %v1080_v15 }
 0xa56   : > { %2555 = vtanh.f32 %v1153_v47 }
 0xa57   : > { %2557 = vtanh.f32 %v1226_v2 }
 0xa5e   : > { %v2552_v17 = vpop.eup %2551 }
 0xa5f   : > { %1247 = vrot.lane.b32.xlu0 %v2552_v17, %s2725_s18  ;;  %v2554_v35 = vpop.eup %2553  ;;  %v2257_v17 = vld [vmem:[%s3515_s12 + $0x1] ss:$0 sm:$0xff] }
 0xa60   : > { %v1084_v20 = vadd.f32 1.0, %v2554_v35  ;;  %v2556_v3 = vpop.eup %2555  ;;  %v1024_v35 = vadd.f32 %v3921_v25, %v1023_v11 }
 0xa61   : > { %v1157_v1 = vadd.f32 1.0, %v2556_v3  ;;  %v2558_v14 = vpop.eup %2557 }
 0xa62   : > { %v1086_v28 = vmul.f32 0.5, %v1084_v20  ;;  %v1230_v23 = vadd.f32 1.0, %v2558_v14 }
 0xa63   : > { %v1159_v8 = vmul.f32 0.5, %v1157_v1 }
 0xa64   : > { %v1232_v6 = vmul.f32 0.5, %v1230_v23 }
 0xab1   : > { %v1102_v0 = vpop.permute.xlu1 %1101 }
 0xab2   : > { %v1104_v7 = vmul.f32 %v1102_v0, %v1086_v28  ;;  %v2260_v28 = vld [vmem:[%s3232_s19 + $0x8] sm:$0x3] }
 0xab4   : > { %1267 = vrot.lane.b32.xlu0 %v1104_v7, %s2724_s6 }
 0xab5   : > { %v1175_v42 = vpop.permute.xlu1 %1174 }
 0xab6   : > { %v1177_v45 = vmul.f32 %v1175_v42, %v1159_v8 }
 0xab8   : > { %1343 = vrot.lane.b32.xlu0 %v1177_v45, %s2725_s18 }
 0xad1   : > { %v1248_v15 = vpop.permute.xlu0 %1247 }
 0xad2   : > { %v1250_v47 = vmul.f32 %v1248_v15, %v1232_v6 }
 0xad4   : > { %v1260_v20 = vmul.f32 %v2257_v17, %v1250_v47  ;;  %1416 = vrot.lane.b32.xlu1 %v1250_v47, %s2725_s18  ;;  %v3935_v47 = vld [vmem:[#allocation37_spill] sm:$0xff] }
 0xad6   : > { %v3522_v3 = vadd.f32 %v1260_v20, %v1024_v35 }
 0xb26   : > { %v1268_v0 = vpop.permute.xlu0 %1267 }
 0xb27   : > { %v1270_v1 = vsel %vm39_vm0, %v2260_v28, %v1268_v0 }
 0xb28   : > { %v1271_v8 = vpack.c.bf16 %v1270_v1, %v1270_v1 }
 0xb2a   : > { %2262 = vmatmul.mubr.msk.bf16.vlgmr.msra.gmra.mrb[12].mxu0 %vm143_vm2, %v1271_v8  ;;  %v1344_v26 = vpop.permute.xlu0 %1343 }
 0xb2b   : > { %1422 = vmatpush1.bf16.msra.mxu0 %v3239_v57  ;;  %1453 = vmatprep.mubr.bf16.mxu0 %v3901_v19  ;;  %v1346_v42 = vsel %vm299_vm3, %v1104_v7, %v1344_v26 }
 0xb2c   : > { %1423 = vmatprep.subr.bf16.mxu0 %v3246_v53  ;;  %v1347_v2 = vpack.c.bf16 %v1346_v42, %v1346_v42 }
 0xb2e   : > { %1381 = vmatmul.mubr.bf16.vlgmr.msra.gmra.mrb[12].mxu1 %v1347_v2 }
 0xb2f   : > { %1424 = vmatpush1.bf16.msra.mxu0 %v3253_v32  ;;  %1512 = vmatpush1.bf16.msra.mxu1 %v3031_v27 }
 0xb30   : > { %1425 = vmatprep.subr.bf16.mxu0 %v3260_v56  ;;  %1513 = vmatprep.subr.bf16.mxu1 %v3040_v29 }
 0xb31   : > { %1543 = vmatprep.mubr.bf16.mxu1 %v3901_v19 }
 0xb33   : > { %1426 = vmatpush1.bf16.msra.mxu0 %v3269_v54  ;;  %1514 = vmatpush1.bf16.msra.mxu1 %v3045_v30 }
 0xb34   : > { %1427 = vmatprep.subr.bf16.mxu0 %v3275_v55  ;;  %1515 = vmatprep.subr.bf16.mxu1 %v3066_v34  ;;  %v3923_v34 = vld [vmem:[#allocation27_spill] sm:$0xff] }
 0xb37   : > { %1428 = vmatpush1.bf16.msra.mxu0 %v3283_v59  ;;  %1516 = vmatpush1.bf16.msra.mxu1 %v3084_v39  ;;  %v3924_v39 = vld [vmem:[#allocation28_spill] sm:$0xff] }
 0xb38   : > { %1429 = vmatprep.subr.bf16.mxu0 %v3289_v61  ;;  %1517 = vmatprep.subr.bf16.mxu1 %v3091_v40  ;;  %v3925_v40 = vld [vmem:[#allocation29_spill] sm:$0xff] }
 0xb3b   : > { %1430 = vmatpush1.bf16.msra.mxu0 %v3297_v22  ;;  %1518 = vmatpush1.bf16.msra.mxu1 %v3114_v58  ;;  %v3927_v58 = vld [vmem:[#allocation31_spill] sm:$0xff] }
 0xb3c   : > { %1431 = vmatprep.subr.bf16.mxu0 %v3303_v52  ;;  %1519 = vmatprep.subr.bf16.mxu1 %v3120_v60  ;;  %v3929_v60 = vld [vmem:[#allocation33_spill] sm:$0xff] }
 0xb3f   : > { %1432 = vmatpush1.bf16.msra.mxu0 %v3311_v51  ;;  %1520 = vmatpush1.bf16.msra.mxu1 %v3138_v4  ;;  %v3930_v4 = vld [vmem:[#allocation34_spill] sm:$0xff] }
 0xb40   : > { %1433 = vmatprep.subr.bf16.mxu0 %v3317_v50  ;;  %1521 = vmatprep.subr.bf16.mxu1 %v3144_v5 }
 0xb43   : > { %1434 = vmatpush1.bf16.msra.mxu0 %v3325_v49  ;;  %1522 = vmatpush1.bf16.msra.mxu1 %v3162_v9 }
 0xb44   : > { %1435 = vmatprep.subr.bf16.mxu0 %v3331_v48  ;;  %1523 = vmatprep.subr.bf16.mxu1 %v3168_v10  ;;  %v3933_v10 = vld [vmem:[#allocation5_spill] sm:$0xff] }
 0xb46   : > { %v1417_v27 = vpop.permute.xlu1 %1416 }
 0xb47   : > { %v1419_v29 = vsel %vm299_vm3, %v1177_v45, %v1417_v27  ;;  %1436 = vmatpush1.bf16.msra.mxu0 %v3341_v44  ;;  %1524 = vmatpush1.bf16.msra.mxu1 %v3189_v16  ;;  %v3934_v45 = vld [vmem:[#allocation23_spill] sm:$0xff] }
 0xb48   : > { %v1420_v30 = vpack.c.bf16 %v1419_v29, %v1419_v29  ;;  %1584 = vmatprep.subr.bf16.mxu0 %v3051_v31  ;;  %2269 = vmatprep.subr.msk.bf16.mxu1 %vm147_vm1, %v3192_v18  ;;  %v3922_v31 = vld [vmem:[#allocation26_spill] sm:$0xff] }
 0xb4a   : > { %1454 = vmatmul.mubr.bf16.vlgmr.msra.gmra.mrb[16].mxu0 %v1420_v30 }
 0xb4b   : > { %1585 = vmatpush1.bf16.msra.mxu0 %v3058_v33  ;;  %1616 = vmatprep.mubr.bf16.mxu0 %v3901_v19  ;;  %v3926_v33 = vld [vmem:[#allocation30_spill] sm:$0xff] }
 0xb4c   : > { %1586 = vmatprep.subr.bf16.mxu0 %v3073_v37  ;;  %1526 = vmatpush1.bf16.msra.mxu1 %v3210_v24  ;;  %v3928_v37 = vld [vmem:[#allocation32_spill] sm:$0xff] }
 0xb4d   : > { %1657 = vmatprep.subr.bf16.mxu1 %v3215_v12 }
 0xb4f   : > { %1587 = vmatpush1.bf16.msra.mxu0 %v3078_v38  ;;  %v3931_v38 = vld [vmem:[#allocation35_spill] sm:$0xff] }
 0xb50   : > { %1588 = vmatprep.subr.bf16.mxu0 %v3096_v41  ;;  %v3932_v41 = vld [vmem:[#allocation36_spill] sm:$0xff] }
 0xb53   : > { %1589 = vmatpush1.bf16.msra.mxu0 %v3922_v31 }
 0xb54   : > { %1590 = vmatprep.subr.bf16.mxu0 %v3923_v34 }
 0xb57   : > { %1591 = vmatpush1.bf16.msra.mxu0 %v3924_v39 }
 0xb58   : > { %1592 = vmatprep.subr.bf16.mxu0 %v3925_v40 }
 0xb5b   : > { %1593 = vmatpush1.bf16.msra.mxu0 %v3926_v33 }
 0xb5c   : > { %1594 = vmatprep.subr.bf16.mxu0 %v3927_v58 }
 0xb5f   : > { %1595 = vmatpush1.bf16.msra.mxu0 %v3928_v37 }
 0xb60   : > { %1596 = vmatprep.subr.bf16.mxu0 %v3929_v60 }
 0xb63   : > { %1597 = vmatpush1.bf16.msra.mxu0 %v3930_v4 }
 0xb64   : > { %1598 = vmatprep.subr.bf16.mxu0 %v3931_v38 }
 0xb67   : > { %1599 = vmatpush1.bf16.msra.mxu0 %v3932_v41 }
 0xbfd   : > { %v1309_v5 = vpop.f32.mrb[12].mxu0 }
 0xbfe   : > { %v1311_v9 = vpop.f32.mrb[13].mxu0  ;;  %v1310_v0 = vadd.f32 %v1309_v5, %v2854_v36 }
 0xbff   : > { %v3581_v16 = vadd.f32 %v1311_v9, %v3933_v10  ;;  %v1313_v18 = vpop.f32.mrb[14].mxu0 }
 0xc00   : > { %v1314_v24 = vpop.f32.mrb[15].mxu0  ;;  %v1316_v1 = vmul.f32 0.5, %v1310_v0 }
 0xc01   : > { %2559 = vtanh.f32 %v3581_v16  ;;  %v1382_v12 = vpop.f32.mrb[12].mxu1 }
 0xc02   : > { %v1384_v7 = vpop.f32.mrb[13].mxu1  ;;  %v1383_v8 = vadd.f32 %v1382_v12, %v2974_v21 }
 0xc03   : > { %v1385_v14 = vadd.f32 %v1384_v7, %v3934_v45  ;;  %v1386_v23 = vpop.f32.mrb[14].mxu1 }
 0xc04   : > { %v1387_v46 = vpop.f32.mrb[15].mxu1  ;;  %v1389_v26 = vmul.f32 0.5, %v1383_v8 }
 0xc05   : > { %2561 = vtanh.f32 %v1385_v14 }
 0xc0b   : > { %v2560_v11 = vpop.eup %2559 }
 0xc0c   : > { %1327 = vrot.lane.b32.xlu1 %v2560_v11, %s2725_s18 }
 0xc0f   : > { %v2562_v6 = vpop.eup %2561 }
 0xc10   : > { %1400 = vrot.lane.b32.xlu1 %v2562_v6, %s2725_s18 }
 0xc1d   : > { %v1455_v17 = vpop.f32.mrb[16].mxu0 }
 0xc1e   : > { %v1457_v15 = vpop.f32.mrb[17].mxu0  ;;  %v1456_v33 = vadd.f32 %v1455_v17, %v3388_v43 }
 0xc1f   : > { %v3588_v25 = vadd.f32 %v1457_v15, %v3935_v47  ;;  %v1459_v35 = vpop.f32.mrb[18].mxu0 }
 0xc20   : > { %v1460_v20 = vpop.f32.mrb[19].mxu0  ;;  %v1462_v37 = vmul.f32 0.5, %v1456_v33  ;;  %v1390_v35 = vmul.f32 0.5, %v1385_v14 }
 0xc21   : > { %2563 = vtanh.f32 %v3588_v25 }
 0xc22   : > { %2565 = vtanh.f32 %v1316_v1 }
 0xc23   : > { %2567 = vtanh.f32 %v1389_v26 }
 0xc24   : > { %2569 = vtanh.f32 %v1462_v37 }
 0xc2b   : > { %v2564_v28 = vpop.eup %2563 }
 0xc2c   : > { %1473 = vrot.lane.b32.xlu0 %v2564_v28, %s2725_s18  ;;  %v2566_v42 = vpop.eup %2565 }
 0xc2d   : > { %v1320_v2 = vadd.f32 1.0, %v2566_v42  ;;  %v2568_v27 = vpop.eup %2567 }
 0xc2e   : > { %v1393_v31 = vadd.f32 1.0, %v2568_v27  ;;  %v2570_v60 = vpop.eup %2569 }
 0xc2f   : > { %v1322_v29 = vmul.f32 0.5, %v1320_v2  ;;  %v1466_v4 = vadd.f32 1.0, %v2570_v60 }
 0xc30   : > { %v1395_v39 = vmul.f32 0.5, %v1393_v31  ;;  %v2265_v31 = vld [vmem:[%s3515_s12 + $0x2] ss:$0 sm:$0xff] }
 0xc31   : > { %v1468_v38 = vmul.f32 0.5, %v1466_v4  ;;  %v1325_v9 = vmul.f32 %v1322_v29, %v3493_v63 }
 0xc32   : > { %v1398_v12 = vmul.f32 %v1395_v39, %v3497_v62  ;;  %v1317_v62 = vmul.f32 0.5, %v3581_v16  ;;  %v1463_v16 = vmul.f32 0.5, %v3588_v25 }
 0xc33   : > { %v1471_v63 = vmul.f32 %v1468_v38, %v3503_v13 }
 0xc7e   : > { %v1328_v30 = vpop.permute.xlu1 %1327 }
 0xc7f   : > { %v1330_v34 = vmul.f32 %v1328_v30, %v1322_v29 }
 0xc81   : > { %1332 = vrot.lane.b32.xlu0 %v1330_v34, %s2725_s18 }
 0xc82   : > { %v1401_v40 = vpop.permute.xlu1 %1400 }
 0xc83   : > { %v1403_v58 = vmul.f32 %v1401_v40, %v1395_v39 }
 0xc85   : > { %1405 = vrot.lane.b32.xlu0 %v1403_v58, %s2725_s18  ;;  %v2268_v58 = vld [vmem:[%s3232_s19 + $0xa] sm:$0x3] }
 0xc9e   : > { %v1474_v41 = vpop.permute.xlu0 %1473 }
 0xc9f   : > { %v1476_v5 = vmul.f32 %v1474_v41, %v1468_v38 }
 0xca1   : > { %1478 = vrot.lane.b32.xlu1 %v1476_v5, %s2725_s18 }
 0xcf3   : > { %v1333_v18 = vpop.permute.xlu0 %1332 }
 0xcf4   : > { %v3599_v24 = vadd.f32 %v1333_v18, %v1325_v9 }
 0xcf6   : > { %2571 = vtanh.f32 %v3599_v24 }
 0xcf7   : > { %v1406_v7 = vpop.permute.xlu0 %1405 }
 0xcf8   : > { %v3603_v23 = vadd.f32 %v1406_v7, %v1398_v12 }
 0xcfa   : > { %2573 = vtanh.f32 %v3603_v23 }
 0xd00   : > { %v2572_v46 = vpop.eup %2571 }
 0xd01   : > { %1338 = vrot.lane.b32.xlu1 %v2572_v46, %s2725_s18 }
 0xd04   : > { %v2574_v11 = vpop.eup %2573 }
 0xd05   : > { %1411 = vrot.lane.b32.xlu1 %v2574_v11, %s2725_s18 }
 0xd13   : > { %v1479_v6 = vpop.permute.xlu1 %1478 }
 0xd14   : > { %v3609_v17 = vadd.f32 %v1479_v6, %v1471_v63 }
 0xd16   : > { %2575 = vtanh.f32 %v3609_v17 }
 0xd17   : > { %2577 = vtanh.f32 %v1317_v62 }
 0xd18   : > { %2579 = vtanh.f32 %v1390_v35 }
 0xd19   : > { %2581 = vtanh.f32 %v1463_v16 }
 0xd20   : > { %v2576_v15 = vpop.eup %2575 }
 0xd21   : > { %1484 = vrot.lane.b32.xlu0 %v2576_v15, %s2725_s18  ;;  %v2578_v20 = vpop.eup %2577 }
 0xd22   : > { %v1321_v28 = vadd.f32 1.0, %v2578_v20  ;;  %v2580_v0 = vpop.eup %2579 }
 0xd23   : > { %v1394_v13 = vadd.f32 1.0, %v2580_v0  ;;  %v2582_v14 = vpop.eup %2581 }
 0xd24   : > { %v1323_v1 = vmul.f32 0.5, %v1321_v28  ;;  %v1467_v29 = vadd.f32 1.0, %v2582_v14 }
 0xd25   : > { %v1396_v42 = vmul.f32 0.5, %v1394_v13 }
 0xd26   : > { %v1469_v30 = vmul.f32 0.5, %v1467_v29 }
 0xd73   : > { %v1339_v8 = vpop.permute.xlu1 %1338 }
 0xd74   : > { %v1341_v26 = vmul.f32 %v1339_v8, %v1323_v1 }
 0xd76   : > { %1503 = vrot.lane.b32.xlu0 %v1341_v26, %s2724_s6 }
 0xd77   : > { %v1412_v2 = vpop.permute.xlu1 %1411 }
 0xd78   : > { %v1414_v27 = vmul.f32 %v1412_v2, %v1396_v42 }
 0xd7a   : > { %1579 = vrot.lane.b32.xlu0 %v1414_v27, %s2725_s18 }
 0xd93   : > { %v1485_v34 = vpop.permute.xlu0 %1484 }
 0xd94   : > { %v1487_v39 = vmul.f32 %v1485_v34, %v1469_v30 }
 0xd96   : > { %v1496_v40 = vmul.f32 %v2265_v31, %v1487_v39  ;;  %1652 = vrot.lane.b32.xlu1 %v1487_v39, %s2725_s18 }
 0xd98   : > { %v3620_v33 = vadd.f32 %v1496_v40, %v3522_v3 }
 0xde8   : > { %v1504_v37 = vpop.permute.xlu0 %1503 }
 0xde9   : > { %v1506_v60 = vsel %vm39_vm0, %v2268_v58, %v1504_v37 }
 0xdea   : > { %v1507_v4 = vpack.c.bf16 %v1506_v60, %v1506_v60 }
 0xdec   : > { %2270 = vmatmul.mubr.msk.bf16.vlgmr.msra.gmra.mrb[16].mxu1 %vm143_vm2, %v1507_v4  ;;  %v1580_v25 = vpop.permute.xlu0 %1579 }
 0xded   : > { %1658 = vmatpush1.bf16.msra.mxu1 %v3239_v57  ;;  %1689 = vmatprep.mubr.bf16.mxu1 %v3901_v19  ;;  %v1582_v38 = vsel %vm299_vm3, %v1341_v26, %v1580_v25 }
 0xdee   : > { %1659 = vmatprep.subr.bf16.mxu1 %v3246_v53  ;;  %v1583_v41 = vpack.c.bf16 %v1582_v38, %v1582_v38 }
 0xdf0   : > { %1617 = vmatmul.mubr.bf16.vlgmr.msra.gmra.mrb[20].mxu0 %v1583_v41 }
 0xdf1   : > { %1660 = vmatpush1.bf16.msra.mxu1 %v3253_v32 }
 0xdf2   : > { %1661 = vmatprep.subr.bf16.mxu1 %v3260_v56 }
 0xdf5   : > { %1662 = vmatpush1.bf16.msra.mxu1 %v3269_v54 }
 0xdf6   : > { %1663 = vmatprep.subr.bf16.mxu1 %v3275_v55 }
 0xdf9   : > { %1664 = vmatpush1.bf16.msra.mxu1 %v3283_v59 }
 0xdfa   : > { %1665 = vmatprep.subr.bf16.mxu1 %v3289_v61 }
 0xdfd   : > { %1666 = vmatpush1.bf16.msra.mxu1 %v3297_v22 }
 0xdfe   : > { %1667 = vmatprep.subr.bf16.mxu1 %v3303_v52 }
 0xe01   : > { %1668 = vmatpush1.bf16.msra.mxu1 %v3311_v51 }
 0xe02   : > { %1669 = vmatprep.subr.bf16.mxu1 %v3317_v50 }
 0xe05   : > { %1670 = vmatpush1.bf16.msra.mxu1 %v3325_v49 }
 0xe06   : > { %1671 = vmatprep.subr.bf16.mxu1 %v3331_v48 }
 0xe08   : > { %v1653_v53 = vpop.permute.xlu1 %1652 }
 0xe09   : > { %v1655_v57 = vsel %vm299_vm3, %v1414_v27, %v1653_v53  ;;  %1672 = vmatpush1.bf16.msra.mxu1 %v3341_v44 }
 0xe0a   : > { %v1656_v32 = vpack.c.bf16 %v1655_v57, %v1655_v57 }
 0xe0c   : > { %1690 = vmatmul.mubr.bf16.vlgmr.msra.gmra.mrb[20].mxu1 %v1656_v32 }
 0xebf   : > { %v1545_v19 = vpop.f32.mrb[16].mxu1 }
 0xec0   : > { %v1547_v56 = vpop.f32.mrb[17].mxu1  ;;  %v1546_v12 = vadd.f32 %v1545_v19, %v2854_v36  ;;  %v2610_v36 = vld [vmem:[%s3805_s5 + $0x14] ss:$8 sps:$4 sm:$0xff] (%p478_p0)  }
 0xec1   : > { %v3644_v54 = vadd.f32 %v1547_v56, %v3933_v10  ;;  %v1549_v52 = vpop.f32.mrb[18].mxu1 }
 0xec2   : > { %v1550_v51 = vpop.f32.mrb[19].mxu1  ;;  %v1552_v7 = vmul.f32 0.5, %v1546_v12  ;;  %v2613_v12 = vld [vmem:[%s3805_s5 + $0x24] ss:$8 sps:$4 sm:$0xff] (%p478_p0)  }
 0xec3   : > { %2583 = vtanh.f32 %v3644_v54  ;;  %v1618_v50 = vpop.f32.mrb[20].mxu0 }
 0xec4   : > { %v1620_v49 = vpop.f32.mrb[21].mxu0  ;;  %v1619_v15 = vadd.f32 %v1618_v50, %v2974_v21  ;;  %v2273_v50 = vld [vmem:[%s3515_s12 + $0x3] ss:$0 sm:$0xff] }
 0xec5   : > { %v1622_v55 = vpop.f32.mrb[22].mxu0  ;;  %v1621_v10 = vadd.f32 %v1620_v49, %v3934_v45 }
 0xec6   : > { %v1623_v48 = vpop.f32.mrb[23].mxu0  ;;  %v1625_v35 = vmul.f32 0.5, %v1619_v15 }
 0xec7   : > { %v1626_v57 = vmul.f32 0.5, %v1621_v10 }
 0xecd   : > { %v2584_v59 = vpop.eup %2583 }
 0xece   : > { %1563 = vrot.lane.b32.xlu0 %v2584_v59, %s2725_s18 }
 0xedf   : > { %v1691_v61 = vpop.f32.mrb[20].mxu1 }
 0xee0   : > { %v1693_v44 = vpop.f32.mrb[21].mxu1  ;;  %v1692_v45 = vadd.f32 %v1691_v61, %v3388_v43 }
 0xee1   : > { %v1694_v22 = vadd.f32 %v1693_v44, %v3935_v47  ;;  %v1695_v3 = vpop.f32.mrb[22].mxu1 }
 0xee2   : > { %v1696_v5 = vpop.f32.mrb[23].mxu1  ;;  %v1698_v62 = vmul.f32 0.5, %v1692_v45  ;;  %v2618_v45 = vld [vmem:[%s3805_s5 + $0x30] ss:$8 sps:$4 sm:$0xff] (%p478_p0)  }
 0xee3   : > { %2585 = vtanh.f32 %v1694_v22  ;;  %v1699_v53 = vmul.f32 0.5, %v1694_v22  ;;  %v2609_v5 = vld [vmem:[%s3805_s5] ss:$8 sps:$4 sm:$0xff] (%p478_p0)  }
 0xee4   : > { %2587 = vtanh.f32 %v1621_v10  ;;  %v3948_v10 = vld [vmem:[#allocation7_spill] sm:$0xff] (%p478_p0) }
 0xee5   : > { %2589 = vtanh.f32 %v1552_v7  ;;  %v3951_v7 = vld [vmem:[#allocation10_spill] sm:$0xff] (%p478_p0) }
 0xee6   : > { %2591 = vtanh.f32 %v1698_v62 }
 0xee7   : > { %2593 = vtanh.f32 %v1625_v35  ;;  %v3956_v35 = vld [vmem:[#allocation15_spill] sm:$0xff] (%p478_p0) }
 0xeed   : > { %v2586_v9 = vpop.eup %2585 }
 0xeee   : > { %1709 = vrot.lane.b32.xlu1 %v2586_v9, %s2725_s18  ;;  %v2588_v18 = vpop.eup %2587  ;;  %v3949_v9 = vmov (%p478_p0), 0  }
 0xeef   : > { %v2590_v46 = vpop.eup %2589  ;;  %1952 = vmatprep.mubr.bf16.mxu1 (%p478_p0), %v3949_v9  ;;  %1772 = vmatprep.mubr.bf16.mxu0 (%p478_p0), %v3949_v9 }
 0xef0   : > { %v1556_v11 = vadd.f32 1.0, %v2590_v46  ;;  %v2592_v20 = vpop.eup %2591  ;;  %v3952_v46 = vld [vmem:[#allocation11_spill] sm:$0xff] (%p478_p0) }
 0xef1   : > { %v1702_v28 = vadd.f32 1.0, %v2592_v20  ;;  %v2594_v0 = vpop.eup %2593  ;;  %v2621_v20 = vld [vmem:[%s3805_s5 + $0x40] ss:$8 sps:$4 sm:$0xff] (%p478_p0)  }
 0xef2   : > { %1636 = vrot.lane.b32.xlu1 %v2588_v18, %s2725_s18  ;;  %v1558_v63 = vmul.f32 0.5, %v1556_v11  ;;  %v1629_v8 = vadd.f32 1.0, %v2594_v0  ;;  %v2612_v18 = vld [vmem:[%s3805_s5 + $0x10] ss:$8 sps:$4 sm:$0xff] (%p478_p0)   ;;  %v2615_v11 = vld [vmem:[%s3805_s5 + $0x20] ss:$8 sps:$4 sm:$0xff] (%p478_p0)  }
 0xef3   : > { %v1704_v1 = vmul.f32 0.5, %v1702_v28  ;;  %v2622_v28 = vld [vmem:[%s3805_s5 + $0x54] ss:$8 sps:$4 sm:$0xff] (%p478_p0)   ;;  %v3957_v0 = vld [vmem:[#allocation16_spill] sm:$0xff] (%p478_p0) }
 0xef4   : > { %v1631_v42 = vmul.f32 0.5, %v1629_v8  ;;  %v1561_v16 = vmul.f32 %v1558_v63, %v3599_v24 }
 0xef5   : > { %v1707_v30 = vmul.f32 %v1704_v1, %v3609_v17  ;;  %v1553_v17 = vmul.f32 0.5, %v3644_v54 }
 0xef6   : > { %v1634_v39 = vmul.f32 %v1631_v42, %v3603_v23 }
 0xf40   : > { %v1564_v47 = vpop.permute.xlu0 %1563 }
 0xf41   : > { %v1566_v6 = vmul.f32 %v1564_v47, %v1558_v63  ;;  %v2616_v63 = vld [vmem:[%s3805_s5 + $0x34] ss:$8 sps:$4 sm:$0xff] (%p478_p0)   ;;  %v3953_v47 = vld [vmem:[#allocation12_spill] sm:$0xff] (%p478_p0) }
 0xf43   : > { %1568 = vrot.lane.b32.xlu1 %v1566_v6, %s2725_s18  ;;  %v3954_v6 = vld [vmem:[#allocation13_spill] sm:$0xff] (%p478_p0) }
 0xf60   : > { %v1710_v13 = vpop.permute.xlu1 %1709 }
 0xf61   : > { %v1712_v26 = vmul.f32 %v1710_v13, %v1704_v1  ;;  %v3958_v1 = vld [vmem:[#allocation17_spill] sm:$0xff] (%p478_p0)  ;;  %v2625_v13 = vld [vmem:[%s3805_s5 + $0x64] ss:$8 sps:$4 sm:$0xff] (%p478_p0)  }
 0xf63   : > { %1714 = vrot.lane.b32.xlu0 %v1712_v26, %s2725_s18  ;;  %v3959_v26 = vld [vmem:[#allocation18_spill] sm:$0xff] (%p478_p0) }
 0xf64   : > { %v1637_v2 = vpop.permute.xlu1 %1636 }
 0xf65   : > { %v1639_v27 = vmul.f32 %v1637_v2, %v1631_v42  ;;  %v3960_v42 = vld [vmem:[#allocation19_spill] sm:$0xff] (%p478_p0) }
 0xf66   :  { %v2627_v2 = vld [vmem:[%s3805_s5 + $0x60] ss:$8 sps:$4 sm:$0xff] (%p478_p0)  }
 0xf67   : > { %1641 = vrot.lane.b32.xlu0 %v1639_v27, %s2725_s18  ;;  %v2628_v27 = vld [vmem:[%s3805_s5 + $0x74] ss:$8 sps:$4 sm:$0xff] (%p478_p0)  }
 0xfb5   : > { %v1569_v14 = vpop.permute.xlu1 %1568 }
 0xfb6   : > { %v1571_v8 = vadd.f32 %v1569_v14, %v1561_v16   ;;  %v3961_v16 = vld [vmem:[#allocation20_spill] sm:$0xff] (%p478_p0)  ;;  %v3962_v14 = vld [vmem:[#allocation21_spill] sm:$0xff] (%p478_p0) }
 0xfb8   : > { %2595 = vtanh.f32 %v1571_v8  ;;  %v2624_v8 = vld [vmem:[%s3805_s5 + $0x50] ss:$8 sps:$4 sm:$0xff] (%p478_p0)  }
 0xfc2   : > { %v2596_v29 = vpop.eup %2595 }
 0xfc3   : > { %1574 = vrot.lane.b32.xlu0 %v2596_v29, %s2725_s18  ;;  %v2630_v29 = vld [vmem:[%s3805_s5 + $0x70] ss:$8 sps:$4 sm:$0xff] (%p478_p0)  }
 0xfd5   : > { %v1715_v31 = vpop.permute.xlu0 %1714 }
 0xfd6   : > { %v3661_v62 = vadd.f32 %v1715_v31, %v1707_v30   ;;  %v3963_v30 = vld [vmem:[#allocation22_spill] sm:$0xff] (%p478_p0) }
 0xfd8   : > { %v3936_v34 = vmov %v3661_v62 }
 0xfd9   : > { %2597 = vtanh.f32 %v3936_v34  ;;  %v1642_v40 = vpop.permute.xlu0 %1641  ;;  %v3942_v62 = vmov %v3936_v34 }
 0xfda   : > { %v3665_v3 = vadd.f32 %v1642_v40, %v1634_v39   ;;  %v3955_v62 = vld [vmem:[#allocation14_spill] sm:$0xff] (%p478_p0) }
 0xfdc   : > { %v3937_v58 = vmov %v3665_v3 }
 0xfdd   : > { %2599 = vtanh.f32 %v3937_v58  ;;  %v3944_v3 = vmov %v3937_v58 }
 0xfde   : > { %2601 = vtanh.f32 %v1553_v17  ;;  %v3950_v3 = vld [vmem:[#allocation9_spill] sm:$0xff] (%p478_p0) }
 0xfdf   : > { %2603 = vtanh.f32 %v1699_v53 }
 0xfe0   : > { %2605 = vtanh.f32 %v1626_v57 }
 0xfe3   : > { %v2598_v24 = vpop.eup %2597 }
 0xfe4   : > { %1720 = vrot.lane.b32.xlu1 %v2598_v24, %s2725_s18 }
 0xfe7   : > { %v2600_v37 = vpop.eup %2599 }
 0xfe8   : > { %1647 = vrot.lane.b32.xlu1 %v2600_v37, %s2725_s18  ;;  %v2602_v60 = vpop.eup %2601 }
 0xfe9   : > { %v1557_v4 = vadd.f32 1.0, %v2602_v60  ;;  %v2604_v32 = vpop.eup %2603 }
 0xfea   : > { %v1703_v19 = vadd.f32 1.0, %v2604_v32  ;;  %v2606_v56 = vpop.eup %2605  ;;  %v3965_v32 = vld [vmem:[#allocation23_spill] sm:$0xff] (%p478_p0) }
 0xfeb   : > { %v1559_v25 = vmul.f32 0.5, %v1557_v4  ;;  %v1630_v51 = vadd.f32 1.0, %v2606_v56 }
 0xfec   : > { %v1705_v52 = vmul.f32 0.5, %v1703_v19 }
 0xfed   : > { %v1632_v48 = vmul.f32 0.5, %v1630_v51 }
0x1035   : > { %v1575_v38 = vpop.permute.xlu0 %1574 }
0x1036   : > { %v3671_v23 = vmul.f32 %v1575_v38, %v1559_v25   ;;  %v3964_v25 = vld [vmem:[#allocation37_spill] sm:$0xff] (%p478_p0) }
0x1038   : > { %v3938_v41 = vmov %v3671_v23 }
0x1039   : > { %v3946_v22 = vmov %v3938_v41 }
0x103a   :  { %v3947_v22 = vld [vmem:[#allocation8_spill] sm:$0xff] (%p478_p0) }
0x103b   :  { %1740 = vmatprep.subr.bf16.mxu0 (%p478_p0), %v3947_v22 }
0x103c   :  { %1741 = vmatpush1.bf16.msra.mxu0 (%p478_p0), %v3948_v10 }
0x103d   :  { %1742 = vmatprep.subr.bf16.mxu0 (%p478_p0), %v3950_v3 }
0x1040   :  { %1743 = vmatpush1.bf16.msra.mxu0 (%p478_p0), %v3951_v7 }
0x1041   :  { %1744 = vmatprep.subr.bf16.mxu0 (%p478_p0), %v3952_v46 }
0x1044   :  { %1745 = vmatpush1.bf16.msra.mxu0 (%p478_p0), %v3953_v47 }
0x1045   :  { %1746 = vmatprep.subr.bf16.mxu0 (%p478_p0), %v3954_v6 }
0x1048   :  { %1747 = vmatpush1.bf16.msra.mxu0 (%p478_p0), %v3955_v62 }
0x1049   :  { %1748 = vmatprep.subr.bf16.mxu0 (%p478_p0), %v3956_v35 }
0x104c   :  { %1749 = vmatpush1.bf16.msra.mxu0 (%p478_p0), %v3957_v0 }
0x104d   :  { %1750 = vmatprep.subr.bf16.mxu0 (%p478_p0), %v3958_v1 }
0x1050   :  { %1751 = vmatpush1.bf16.msra.mxu0 (%p478_p0), %v3959_v26 }
0x1051   :  { %1752 = vmatprep.subr.bf16.mxu0 (%p478_p0), %v3960_v42 }
0x1054   :  { %1753 = vmatpush1.bf16.msra.mxu0 (%p478_p0), %v3961_v16 }
0x1055   :  { %1754 = vmatprep.subr.bf16.mxu0 (%p478_p0), %v3962_v14 }
0x1056   : > { %v1721_v49 = vpop.permute.xlu1 %1720 }
0x1057   : > { %v1723_v54 = vmul.f32 %v1721_v49, %v1705_v52  }
0x1058   :  { %480 = sbr.rel (!%p478_p0) target bundleno = 1327 (0x52f), region = 74  ;;  %1755 = vmatpush1.bf16.msra.mxu0 (%p478_p0), %v3963_v30 }
0x1059   : > { %v1732_v55 = vmul.f32 %v2273_v50, %v1723_v54  ;;  %v3943_v24 = vmov %v1723_v54  ;;  %1808 = vrot.lane.b32.xlu0 (%p478_p0), %v1723_v54, %s2722_s22 }
0x105a   : > { %v1648_v59 = vpop.permute.xlu1 %1647 }
0x105b   : > { %v3675_v23 = vadd.f32 %v1732_v55, %v3620_v33   ;;  %v3677_v15 = vmul.f32 %v1648_v59, %v1632_v48   ;;  %v2607_v33 = vld [vmem:[%s3805_s5 + $0x4] ss:$8 sps:$4 sm:$0xff] (%p478_p0)  }
0x105c   :  { %1920 = vmatprep.subr.bf16.mxu1 (%p478_p0), %v2607_v33  ;;  %2003 = vmatprep.subr.bf16.mxu0 (%p478_p0), %v2607_v33 }
0x105d   : > { %v3939_v61 = vmov %v3675_v23  ;;  %v3940_v44 = vmov %v3677_v15  ;;  %1921 = vmatpush1.bf16.msra.mxu1 (%p478_p0), %v2609_v5 }
0x105e   : > { %v3941_v23 = vmov %v3939_v61  ;;  %v3945_v15 = vmov %v3940_v44  ;;  %1735 = vrot.lane.b32.xlu0 (%p478_p0), %v3940_v44, %s2722_s22  ;;  %1922 = vmatprep.subr.bf16.mxu1 (%p478_p0), %v2610_v36 }
0x105f   :  { %v2619_v15 = vld [vmem:[%s3805_s5 + $0x44] ss:$8 sps:$4 sm:$0xff]  }
0x1061   :  { %1923 = vmatpush1.bf16.msra.mxu1 %v2612_v18 }
0x1062   :  { %1924 = vmatprep.subr.bf16.mxu1 %v2613_v12 }
0x1065   :  { %1925 = vmatpush1.bf16.msra.mxu1 %v2615_v11 }
0x1066   :  { %1926 = vmatprep.subr.bf16.mxu1 %v2616_v63 }
0x1069   :  { %1927 = vmatpush1.bf16.msra.mxu1 %v2618_v45 }
0x106a   :  { %1928 = vmatprep.subr.bf16.mxu1 %v2619_v15 }
0x106d   :  { %1929 = vmatpush1.bf16.msra.mxu1 %v2621_v20 }
0x106e   :  { %1930 = vmatprep.subr.bf16.mxu1 %v2622_v28 }
0x1071   :  { %1931 = vmatpush1.bf16.msra.mxu1 %v2624_v8 }
0x1072   :  { %1932 = vmatprep.subr.bf16.mxu1 %v2625_v13 }
0x1075   :  { %1933 = vmatpush1.bf16.msra.mxu1 %v2627_v2 }
0x1076   :  { %1934 = vmatprep.subr.bf16.mxu1 %v2628_v27 }
0x1079   :  { %1935 = vmatpush1.bf16.msra.mxu1 %v2630_v29 }
0x10cb   :  { %v1809_v31 = vpop.permute.xlu0 %1808 }
0x10cc   :  { %v1811_v39 = vsel %vm299_vm3, %v3940_v44, %v1809_v31 }
0x10cd   :  { %v1812_v40 = vpack.c.bf16 %v1811_v39, %v1811_v39 }
0x10cf   :  { %1953 = vmatmul.mubr.bf16.vlgmr.msra.gmra.mrb[0].mxu1 %v1812_v40 }
0x10d0   :  { %v1736_v24 = vpop.permute.xlu0 %1735 }
0x10d1   :  { %v1738_v37 = vsel %vm299_vm3, %v3938_v41, %v1736_v24 }
0x10d2   :  { %v1739_v17 = vpack.c.bf16 %v1738_v37, %v1738_v37 }
0x10d4   :  { %1773 = vmatmul.mubr.bf16.vlgmr.msra.gmra.mrb[0].mxu0 %v1739_v17 }
0x10d5   :  { %2004 = vmatpush1.bf16.msra.mxu0 %v2609_v5  ;;  %2035 = vmatprep.mubr.bf16.mxu0 %v3949_v9 }
0x10d6   :  { %2005 = vmatprep.subr.bf16.mxu0 %v2610_v36 }
0x10d9   :  { %2006 = vmatpush1.bf16.msra.mxu0 %v2612_v18 }
0x10da   :  { %2007 = vmatprep.subr.bf16.mxu0 %v2613_v12 }
0x10dd   :  { %2008 = vmatpush1.bf16.msra.mxu0 %v2615_v11 }
0x10de   :  { %2009 = vmatprep.subr.bf16.mxu0 %v2616_v63 }
0x10e1   :  { %2010 = vmatpush1.bf16.msra.mxu0 %v2618_v45 }
0x10e2   :  { %2011 = vmatprep.subr.bf16.mxu0 %v2619_v15 }
0x10e5   :  { %2012 = vmatpush1.bf16.msra.mxu0 %v2621_v20 }
0x10e6   :  { %2013 = vmatprep.subr.bf16.mxu0 %v2622_v28 }
0x10e9   :  { %2014 = vmatpush1.bf16.msra.mxu0 %v2624_v8 }
0x10ea   :  { %2015 = vmatprep.subr.bf16.mxu0 %v2625_v13 }
0x10ed   :  { %2016 = vmatpush1.bf16.msra.mxu0 %v2627_v2 }
0x10ee   :  { %2017 = vmatprep.subr.bf16.mxu0 %v2628_v27 }
0x10f1   :  { %2018 = vmatpush1.bf16.msra.mxu0 %v2630_v29 }
0x11a2   :  { %v1954_v60 = vpop.f32.mrb[0].mxu1 }
0x11a3   :  { %v1956_v4 = vpop.f32.mrb[1].mxu1  ;;  %v1955_v49 = vadd.f32 %v1954_v60, %v3388_v43 }
0x11a4   :  { %v1957_v38 = vadd.f32 %v1956_v4, %v3964_v25  ;;  %v1958_v23 = vpop.f32.mrb[2].mxu1 }
0x11a5   :  { %v1959_v41 = vpop.f32.mrb[3].mxu1  ;;  %v1961_v55 = vmul.f32 0.5, %v1955_v49 }
0x11a6   :  { %2631 = vtanh.f32 %v1957_v38  ;;  %v1962_v45 = vmul.f32 0.5, %v1957_v38 }
0x11a7   :  { %v1774_v53 = vpop.f32.mrb[0].mxu0 }
0x11a8   :  { %v1776_v57 = vpop.f32.mrb[1].mxu0  ;;  %v1775_v54 = vadd.f32 %v1774_v53, %v2974_v21 }
0x11a9   :  { %v1777_v19 = vadd.f32 %v1776_v57, %v3965_v32  ;;  %v1778_v56 = vpop.f32.mrb[2].mxu0  ;;  %v2291_v32 = vld [vmem:[%s3807_s7 + $0x44] ss:$0 sm:$0xff] }
0x11aa   :  { %v1779_v52 = vpop.f32.mrb[3].mxu0  ;;  %v1781_v48 = vmul.f32 0.5, %v1775_v54 }
0x11ab   :  { %2633 = vtanh.f32 %v1777_v19  ;;  %v1782_v28 = vmul.f32 0.5, %v1777_v19  ;;  %v2293_v52 = vld [vmem:[%s3807_s7 + $0x45] ss:$0 sm:$0xff] }
0x11ac   :  { %2635 = vtanh.f32 %v1961_v55 }
0x11ad   :  { %2637 = vtanh.f32 %v1781_v48 }
0x11b0   :  { %v2632_v51 = vpop.eup %2631 }
0x11b1   :  { %1972 = vrot.lane.b32.xlu1 %v2632_v51, %s2722_s22 }
0x11b5   :  { %v2634_v50 = vpop.eup %2633 }
0x11b6   :  { %1792 = vrot.lane.b32.xlu1 %v2634_v50, %s2722_s22  ;;  %v2636_v59 = vpop.eup %2635 }
0x11b7   :  { %v2638_v44 = vpop.eup %2637  ;;  %v1965_v33 = vadd.f32 1.0, %v2636_v59  ;;  %v2294_v59 = vld [vmem:[#allocation2] ss:$0 sm:$0xff] }
0x11b8   :  { %v1785_v22 = vadd.f32 1.0, %v2638_v44 }
0x11b9   :  { %v1967_v5 = vmul.f32 0.5, %v1965_v33 }
0x11ba   :  { %v1787_v36 = vmul.f32 0.5, %v1785_v22 }
0x11bb   :  { %v1970_v21 = vmul.f32 %v1967_v5, %v3936_v34 }
0x11bc   :  { %v1790_v46 = vmul.f32 %v1787_v36, %v3937_v58 }
0x1223   :  { %v1973_v10 = vpop.permute.xlu1 %1972 }
0x1224   :  { %v1975_v9 = vmul.f32 %v1973_v10, %v1967_v5 }
0x1226   :  { %1977 = vrot.lane.b32.xlu0 %v1975_v9, %s2722_s22 }
0x1228   :  { %v1793_v3 = vpop.permute.xlu1 %1792 }
0x1229   :  { %v1795_v18 = vmul.f32 %v1793_v3, %v1787_v36 }
0x122b   :  { %1797 = vrot.lane.b32.xlu1 %v1795_v18, %s2722_s22 }
0x1298   :  { %v1978_v12 = vpop.permute.xlu0 %1977 }
0x1299   :  { %v1980_v7 = vadd.f32 %v1978_v12, %v1970_v21 }
0x129b   :  { %2639 = vtanh.f32 %v1980_v7 }
0x129d   :  { %v1798_v11 = vpop.permute.xlu1 %1797 }
0x129e   :  { %v1800_v63 = vadd.f32 %v1798_v11, %v1790_v46 }
0x12a0   :  { %2641 = vtanh.f32 %v1800_v63 }
0x12a1   :  { %2643 = vtanh.f32 %v1962_v45 }
0x12a2   :  { %2645 = vtanh.f32 %v1782_v28 }
0x12a5   :  { %v2640_v47 = vpop.eup %2639 }
0x12a6   :  { %1983 = vrot.lane.b32.xlu0 %v2640_v47, %s2722_s22 }
0x12aa   :  { %v2642_v6 = vpop.eup %2641 }
0x12ab   :  { %1803 = vrot.lane.b32.xlu1 %v2642_v6, %s2722_s22  ;;  %v2644_v15 = vpop.eup %2643 }
0x12ac   :  { %v1966_v62 = vadd.f32 1.0, %v2644_v15  ;;  %v2646_v58 = vpop.eup %2645 }
0x12ad   :  { %v1786_v0 = vadd.f32 1.0, %v2646_v58 }
0x12ae   :  { %v1968_v35 = vmul.f32 0.5, %v1966_v62 }
0x12af   :  { %v1788_v8 = vmul.f32 0.5, %v1786_v0 }
0x1318   :  { %v1984_v34 = vpop.permute.xlu0 %1983 }
0x1319   :  { %v1986_v20 = vmul.f32 %v1984_v34, %v1968_v35 }
0x131b   :  { %1998 = vrot.lane.b32.xlu0 %v1986_v20, %s2722_s22  ;;  %v1995_v19 = vmul.f32 %v2291_v32, %v1986_v20 }
0x131d   :  { %v1804_v1 = vpop.permute.xlu1 %1803  ;;  %v1996_v49 = vadd.f32 %v1995_v19, %v3939_v61 }
0x131e   :  { %v1806_v13 = vmul.f32 %v1804_v1, %v1788_v8 }
0x138d   :  { %v1999_v26 = vpop.permute.xlu0 %1998 }
0x138e   :  { %v2001_v42 = vsel %vm299_vm3, %v1806_v13, %v1999_v26 }
0x138f   :  { %v2002_v2 = vpack.c.bf16 %v2001_v42, %v2001_v42 }
0x1391   :  { %2036 = vmatmul.mubr.bf16.vlgmr.msra.gmra.mrb[4].mxu0 %v2002_v2 }
0x1464   :  { %v2037_v27 = vpop.f32.mrb[4].mxu0 }
0x1465   :  { %v2039_v16 = vpop.f32.mrb[5].mxu0  ;;  %v2038_v39 = vadd.f32 %v2037_v27, %v3388_v43 }
0x1466   :  { %v2040_v14 = vadd.f32 %v2039_v16, %v3964_v25  ;;  %v2041_v29 = vpop.f32.mrb[6].mxu0 }
0x1467   :  { %v2042_v30 = vpop.f32.mrb[7].mxu0  ;;  %v2044_v40 = vmul.f32 0.5, %v2038_v39 }
0x1468   :  { %2647 = vtanh.f32 %v2040_v14  ;;  %v2045_v53 = vmul.f32 0.5, %v2040_v14 }
0x1469   :  { %2649 = vtanh.f32 %v2044_v40 }
0x1472   :  { %v2648_v31 = vpop.eup %2647 }
0x1473   :  { %2055 = vrot.lane.b32.xlu1 %v2648_v31, %s2722_s22  ;;  %v2650_v24 = vpop.eup %2649 }
0x1474   :  { %v2048_v37 = vadd.f32 1.0, %v2650_v24 }
0x1476   :  { %v2050_v17 = vmul.f32 0.5, %v2048_v37 }
0x1478   :  { %v2053_v38 = vmul.f32 %v2050_v17, %v1980_v7 }
0x14e5   :  { %v2056_v60 = vpop.permute.xlu1 %2055 }
0x14e6   :  { %v2058_v4 = vmul.f32 %v2056_v60, %v2050_v17 }
0x14e8   :  { %2060 = vrot.lane.b32.xlu0 %v2058_v4, %s2722_s22 }
0x155a   :  { %v2061_v23 = vpop.permute.xlu0 %2060 }
0x155b   :  { %v2063_v25 = vadd.f32 %v2061_v23, %v2053_v38 }
0x155d   :  { %2651 = vtanh.f32 %v2063_v25 }
0x155e   :  { %2653 = vtanh.f32 %v2045_v53 }
0x1567   :  { %v2652_v41 = vpop.eup %2651 }
0x1568   :  { %2066 = vrot.lane.b32.xlu1 %v2652_v41, %s2722_s22  ;;  %v2654_v57 = vpop.eup %2653 }
0x1569   :  { %v2049_v43 = vadd.f32 1.0, %v2654_v57 }
0x156b   :  { %v2051_v56 = vmul.f32 0.5, %v2049_v43 }
0x15da   :  { %v2067_v51 = vpop.permute.xlu1 %2066 }
0x15db   :  { %v2069_v50 = vmul.f32 %v2067_v51, %v2051_v56 }
0x15dd   :  { %v2078_v54 = vmul.f32 %v2293_v52, %v2069_v50 }
0x15df   :  { %v2079_v55 = vadd.f32 %v2078_v54, %v1996_v49 }
0x15e1   :  { %v2081_v48 = vsel %vm2080_vm5, %v2079_v55, 0.0 }
0x15e2   :  { %2082 = vadd.xlane.f32.xlu0 %v2081_v48 }
0x166f   :  { %v2083_v44 = vpop.xlane.xlu0 %2082 }
0x1670   :  { %v2091_v33 = vadd.f32 %v2294_v59, %v2083_v44 }
0x1672   :  { %v2092_v22 = vmul.f32 0.5, %v2091_v33 }
0x1674   :  { %2655 = vtanh.f32 %v2092_v22 }
0x167e   :  { %v2656_v5 = vpop.eup %2655 }
0x167f   :  { %v2094_v10 = vadd.f32 1.0, %v2656_v5 }
0x1681   :  { %v2095_v9 = vmul.f32 0.5, %v2094_v10 }
0x1683   :  { %2097 = vst.msk [vmem:[%s3809_s9] sm:$0x3] %vm2096_vm6, %v2095_v9 }

</bundles_post_ra>
